<compile_context>
chip_gen: v7x
topology: tpu7x:2x2x1
jax: 0.10.0
libtpu: 0.0.40
codegen_flags: <defaults>
</compile_context>

<pallas_src>
import math
import functools

import jax
import jax.numpy as jnp
from jax.experimental import pallas as pl
from jax.experimental.pallas import tpu as pltpu

_SUBLANE = 8


def _round_up(x, m):
    return (x + m - 1) // m * m


# ----------------------------------------------------------------------------
# Fused kernel: all layers for one batch tile.
#   refs = (x_ref, w_1, b_1, ..., w_L, b_L, o_ref)
#     x_ref: (TILE_B, c_in)       f32 batch tile (streamed over the grid)
#     w_l:   (c_in_l, c_out_l)    bf16, VMEM-resident (constant index_map)
#     b_l:   (1, c_out_l)         f32,  VMEM-resident
#     o_ref: (TILE_B, c_out)      f32 output tile (real width, no lane padding)
# ----------------------------------------------------------------------------
def _fused_mlp_kernel(*refs):
    x_ref, o_ref = refs[0], refs[-1]
    wb = refs[1:-1]
    num_layers = len(wb) // 2
    h = x_ref[...]                                   # f32
    for l in range(num_layers):                      # static unroll over layers
        w_ref, b_ref = wb[2 * l], wb[2 * l + 1]
        y = jnp.dot(h.astype(jnp.bfloat16), w_ref[...],
                    preferred_element_type=jnp.float32)   # MXU, f32 accumulation
        h = jnp.maximum(y + b_ref[...], 0.0)              # f32 bias + ReLU (VPU)
    o_ref[...] = h.astype(o_ref.dtype)


# ----------------------------------------------------------------------------
# Parameter handling
# ----------------------------------------------------------------------------
def init_linear_mlp_params(key, layer_channels):
    """Matches PyTorch: Linear(c_in, c_out), kaiming_normal_ weight
    (std=sqrt(2/c_in)), bias = 0.  Weight is pre-transposed to (c_in, c_out)."""
    params = []
    for i in range(1, len(layer_channels)):
        c_in, c_out = layer_channels[i - 1], layer_channels[i]
        key, wk = jax.random.split(key)
        std = math.sqrt(2.0 / c_in)
        w_torch_layout = std * jax.random.normal(wk, (c_out, c_in), jnp.float32)
        params.append((jnp.transpose(w_torch_layout),          # (c_in, c_out)
                       jnp.zeros((c_out,), jnp.float32)))
    return params


def pack_mlp_params(params):
    """bf16 weights (halves resident footprint + weight DMA), f32 (1,c_out) biases."""
    return tuple((w.astype(jnp.bfloat16), b.reshape(1, -1).astype(jnp.float32))
                 for (w, b) in params)


# ----------------------------------------------------------------------------
# Forward pass: single fused pallas_call, batch-tiled grid.
# ----------------------------------------------------------------------------
@functools.partial(jax.jit, static_argnames=("tile_b",))
def linear_mlp_forward(x, packed_params, *, tile_b=1024):
    B, c_in = x.shape
    c_out = packed_params[-1][0].shape[1]

    # Batch tile: multiple of 8 sublanes, no bigger than the (row-padded) batch.
    tb = min(_round_up(tile_b, _SUBLANE), _round_up(B, _SUBLANE))
    b_pad = _round_up(B, tb)

    # Pad rows only when needed; channels are never padded on the host.
    x_in = x if b_pad == B else jnp.pad(x, ((0, b_pad - B), (0, 0)))

    in_specs = [pl.BlockSpec((tb, c_in), lambda i: (i, 0))]
    flat_params = []
    for (w, b) in packed_params:
        # Whole-array blocks + constant index_map -> weights stay VMEM-resident.
        in_specs.append(pl.BlockSpec(w.shape, lambda i: (0, 0)))
        in_specs.append(pl.BlockSpec(b.shape, lambda i: (0, 0)))
        flat_params += [w, b]

    grid = (b_pad // tb,)   # v7x: prefer an even step count for 2-TC sharding
    out = pl.pallas_call(
        _fused_mlp_kernel,
        out_shape=jax.ShapeDtypeStruct((b_pad, c_out), jnp.float32),
        grid_spec=pltpu.PrefetchScalarGridSpec(
            num_scalar_prefetch=0,
            grid=grid,
            in_specs=in_specs,
            out_specs=pl.BlockSpec((tb, c_out), lambda i: (i, 0)),
        ),
        compiler_params=pltpu.CompilerParams(
            dimension_semantics=("parallel",)),   # shardable across v7x's 2 TCs
    )(x_in, *flat_params)

    # Slice back only the padded rows (no channel slice needed anymore).
    return out if b_pad == B else out[:B]


if __name__ == "__main__":
    key = jax.random.PRNGKey(0)
    layer_channels = (16, 32, 64, 8)   # LinearMLP(16, 32, 64, 8)
    batch = 1024
    tile_b = 512                       # -> 2 grid steps (even: good for v7x)

    pkey, xkey = jax.random.split(key)
    params = init_linear_mlp_params(pkey, layer_channels)
    packed = pack_mlp_params(params)
    x = jax.random.normal(xkey, (batch, layer_channels[0]), jnp.float32)

    out = linear_mlp_forward(x, packed, tile_b=tile_b)
    jax.block_until_ready(out)

    # Pure-JAX f32 reference of the original module semantics.
    ref = x
    for (w, b) in params:
        ref = jnp.maximum(ref @ w + b[None, :], 0.0)

    assert out.shape == (batch, layer_channels[-1])
    # bf16 matmul operands (f32 accumulation) => relax tolerance vs f32 reference.
    assert jnp.allclose(out, ref, atol=5e-2, rtol=5e-2)

    print("KERNEL_OK")
</pallas_src>

<mosaic_0001>
module attributes {stable_mosaic.version = 11 : i64} {
  func.func @_fused_mlp_kernel(%arg0: i32, %arg1: memref<512x16xf32, #tpu.memory_space<vmem>>, %arg2: memref<16x32xbf16, #tpu.memory_space<vmem>>, %arg3: memref<1x32xf32, #tpu.memory_space<vmem>>, %arg4: memref<32x64xbf16, #tpu.memory_space<vmem>>, %arg5: memref<1x64xf32, #tpu.memory_space<vmem>>, %arg6: memref<64x8xbf16, #tpu.memory_space<vmem>>, %arg7: memref<1x8xf32, #tpu.memory_space<vmem>>, %arg8: memref<512x8xf32, #tpu.memory_space<vmem>>) attributes {dimension_semantics = [#tpu.dimension_semantics<parallel>], iteration_bounds = array<i64: 2>, scalar_prefetch = 0 : i64, scratch_operands = 0 : i64, tpu.core_type = #tpu.core_type<tc>, window_params = [{transform_indices = @transform_0, window_bounds = array<i64: 512, 16>}, {pipeline_mode = #tpu.pipeline_mode<synchronous>, transform_indices = @transform_1, window_bounds = array<i64: 16, 32>}, {pipeline_mode = #tpu.pipeline_mode<synchronous>, transform_indices = @transform_2, window_bounds = array<i64: 1, 32>}, {pipeline_mode = #tpu.pipeline_mode<synchronous>, transform_indices = @transform_3, window_bounds = array<i64: 32, 64>}, {pipeline_mode = #tpu.pipeline_mode<synchronous>, transform_indices = @transform_4, window_bounds = array<i64: 1, 64>}, {pipeline_mode = #tpu.pipeline_mode<synchronous>, transform_indices = @transform_5, window_bounds = array<i64: 64, 8>}, {pipeline_mode = #tpu.pipeline_mode<synchronous>, transform_indices = @transform_6, window_bounds = array<i64: 1, 8>}, {transform_indices = @transform_7, window_bounds = array<i64: 512, 8>}]} {
    %c0 = arith.constant 0 : index
    %c0_0 = arith.constant 0 : index
    %0 = vector.load %arg1[%c0, %c0_0] : memref<512x16xf32, #tpu.memory_space<vmem>>, vector<512x16xf32>
    %1 = arith.truncf %0 : vector<512x16xf32> to vector<512x16xbf16>
    %c0_1 = arith.constant 0 : index
    %c0_2 = arith.constant 0 : index
    %2 = vector.load %arg2[%c0_1, %c0_2] : memref<16x32xbf16, #tpu.memory_space<vmem>>, vector<16x32xbf16>
    %cst = arith.constant dense<0.000000e+00> : vector<512x32xf32>
    %3 = tpu.matmul %1, %2, %cst {dimension_numbers = #tpu.dot_dimension_numbers<[1], [0], [0], [1], [0, 0, 1, 1], [], []>} : vector<512x16xbf16>, vector<16x32xbf16>, vector<512x32xf32> -> vector<512x32xf32>
    %c0_3 = arith.constant 0 : index
    %c0_4 = arith.constant 0 : index
    %4 = vector.load %arg3[%c0_3, %c0_4] : memref<1x32xf32, #tpu.memory_space<vmem>>, vector<1x32xf32>
    %5 = vector.broadcast %4 : vector<1x32xf32> to vector<512x32xf32>
    %6 = arith.addf %3, %5 : vector<512x32xf32>
    %cst_5 = arith.constant 0.000000e+00 : f32
    %7 = vector.broadcast %cst_5 : f32 to vector<512x32xf32>
    %8 = arith.maximumf %6, %7 : vector<512x32xf32>
    %9 = arith.truncf %8 : vector<512x32xf32> to vector<512x32xbf16>
    %c0_6 = arith.constant 0 : index
    %c0_7 = arith.constant 0 : index
    %10 = vector.load %arg4[%c0_6, %c0_7] : memref<32x64xbf16, #tpu.memory_space<vmem>>, vector<32x64xbf16>
    %cst_8 = arith.constant dense<0.000000e+00> : vector<512x64xf32>
    %11 = tpu.matmul %9, %10, %cst_8 {dimension_numbers = #tpu.dot_dimension_numbers<[1], [0], [0], [1], [0, 0, 1, 1], [], []>} : vector<512x32xbf16>, vector<32x64xbf16>, vector<512x64xf32> -> vector<512x64xf32>
    %c0_9 = arith.constant 0 : index
    %c0_10 = arith.constant 0 : index
    %12 = vector.load %arg5[%c0_9, %c0_10] : memref<1x64xf32, #tpu.memory_space<vmem>>, vector<1x64xf32>
    %13 = vector.broadcast %12 : vector<1x64xf32> to vector<512x64xf32>
    %14 = arith.addf %11, %13 : vector<512x64xf32>
    %cst_11 = arith.constant 0.000000e+00 : f32
    %15 = vector.broadcast %cst_11 : f32 to vector<512x64xf32>
    %16 = arith.maximumf %14, %15 : vector<512x64xf32>
    %17 = arith.truncf %16 : vector<512x64xf32> to vector<512x64xbf16>
    %c0_12 = arith.constant 0 : index
    %c0_13 = arith.constant 0 : index
    %18 = vector.load %arg6[%c0_12, %c0_13] : memref<64x8xbf16, #tpu.memory_space<vmem>>, vector<64x8xbf16>
    %cst_14 = arith.constant dense<0.000000e+00> : vector<512x8xf32>
    %19 = tpu.matmul %17, %18, %cst_14 {dimension_numbers = #tpu.dot_dimension_numbers<[1], [0], [0], [1], [0, 0, 1, 1], [], []>} : vector<512x64xbf16>, vector<64x8xbf16>, vector<512x8xf32> -> vector<512x8xf32>
    %c0_15 = arith.constant 0 : index
    %c0_16 = arith.constant 0 : index
    %20 = vector.load %arg7[%c0_15, %c0_16] : memref<1x8xf32, #tpu.memory_space<vmem>>, vector<1x8xf32>
    %21 = vector.broadcast %20 : vector<1x8xf32> to vector<512x8xf32>
    %22 = arith.addf %19, %21 : vector<512x8xf32>
    %cst_17 = arith.constant 0.000000e+00 : f32
    %23 = vector.broadcast %cst_17 : f32 to vector<512x8xf32>
    %24 = arith.maximumf %22, %23 : vector<512x8xf32>
    %c0_18 = arith.constant 0 : index
    %c0_19 = arith.constant 0 : index
    %25 = vector.load %arg8[%c0_18, %c0_19] : memref<512x8xf32, #tpu.memory_space<vmem>>, vector<512x8xf32>
    tpu.vector_store %arg8[%c0_18, %c0_19], %24 {strides = array<i32>} : memref<512x8xf32, #tpu.memory_space<vmem>>, vector<512x8xf32>,
    return
  }
  func.func @transform_0(%arg0: i32) -> (i32, i32) {
    %c0_i32 = arith.constant 0 : i32
    %c0_i32_0 = arith.constant 0 : i32
    return %arg0, %c0_i32 : i32, i32
  }
  func.func @transform_1(%arg0: i32) -> (i32, i32) {
    %c0_i32 = arith.constant 0 : i32
    %c0_i32_0 = arith.constant 0 : i32
    %c0_i32_1 = arith.constant 0 : i32
    return %c0_i32, %c0_i32_0 : i32, i32
  }
  func.func @transform_2(%arg0: i32) -> (i32, i32) {
    %c0_i32 = arith.constant 0 : i32
    %c0_i32_0 = arith.constant 0 : i32
    %c0_i32_1 = arith.constant 0 : i32
    return %c0_i32, %c0_i32_0 : i32, i32
  }
  func.func @transform_3(%arg0: i32) -> (i32, i32) {
    %c0_i32 = arith.constant 0 : i32
    %c0_i32_0 = arith.constant 0 : i32
    %c0_i32_1 = arith.constant 0 : i32
    return %c0_i32, %c0_i32_0 : i32, i32
  }
  func.func @transform_4(%arg0: i32) -> (i32, i32) {
    %c0_i32 = arith.constant 0 : i32
    %c0_i32_0 = arith.constant 0 : i32
    %c0_i32_1 = arith.constant 0 : i32
    return %c0_i32, %c0_i32_0 : i32, i32
  }
  func.func @transform_5(%arg0: i32) -> (i32, i32) {
    %c0_i32 = arith.constant 0 : i32
    %c0_i32_0 = arith.constant 0 : i32
    %c0_i32_1 = arith.constant 0 : i32
    return %c0_i32, %c0_i32_0 : i32, i32
  }
  func.func @transform_6(%arg0: i32) -> (i32, i32) {
    %c0_i32 = arith.constant 0 : i32
    %c0_i32_0 = arith.constant 0 : i32
    %c0_i32_1 = arith.constant 0 : i32
    return %c0_i32, %c0_i32_0 : i32, i32
  }
  func.func @transform_7(%arg0: i32) -> (i32, i32) {
    %c0_i32 = arith.constant 0 : i32
    %c0_i32_0 = arith.constant 0 : i32
    return %arg0, %c0_i32 : i32, i32
  }
}

</mosaic_0001>

<bundles_post_ra>
// kernel: linear_mlp_forward.1
= control target key start
LH: loop header
LB: loop body
LE: loop exit
PB: predicated region body
PF: predicated region fallthrough
CT: control target
= control target key end

     0   :  { %s2482_s24 = smov 0   ;;  %s3056_s0 = inlined_call_operand.vmem [shape: f32[1024,16], index: 0, kind: input, shape index: {}]   ;;  %s3057_s1 = inlined_call_operand.vmem [shape: bf16[16,32], index: 1, kind: input, shape index: {}]   ;;  %s3058_s2 = inlined_call_operand.vmem [shape: f32[1,32], index: 2, kind: input, shape index: {}]   ;;  %s3059_s3 = inlined_call_operand.vmem [shape: bf16[32,64], index: 3, kind: input, shape index: {}]   ;;  %s3060_s4 = inlined_call_operand.vmem [shape: f32[1,64], index: 4, kind: input, shape index: {}]   ;;  %s3061_s5 = inlined_call_operand.vmem [shape: bf16[64,8], index: 5, kind: input, shape index: {}]   ;;  %s3062_s6 = inlined_call_operand.vmem [shape: f32[1,8], index: 6, kind: input, shape index: {}]   ;;  %s3063_s7 = inlined_call_operand.vmem [shape: f32[1024,8], index: 7, kind: output, shape index: {}]  }
   0x1 LB: > { %s1991_s25 = sadd.s32 4294967295, %s2440_s24   ;;  %p1995_p0 = scmp.ge.s32.totalorder %s2440_s24, 1  ;;  %s2440_s24 = sphi %s2482_s24, %s17_s24  }
   0x2   : > { %p238_p1 = scmp.lt.s32.totalorder %s2440_s24, 3 }
   0x4   : > { %p239_p2 = pnand %p1995_p0, %p238_p1 }
   0x5   : > { %v2427_v0 = vld [vmem:[%s3057_s1] sm:$0xff] (!%p239_p2)   ;;  %s1996_s28 = sshll.u32 (!%p239_p2), %s1991_s25, 6  ;;  %vm394_vm0 = vcmask (!%p239_p2), 130048   ;;  %v2429_v28 = vld [vmem:[%s3059_s3 + $0x8] sm:$0xff] (!%p239_p2)   ;;  %vm899_vm1 = vcmask (!%p239_p2), 261120   ;;  %vm1420_vm2 = vcmask (!%p239_p2), 523264  }
   0x6   : > { %242 = sbr.rel (%p239_p2) target bundleno = 804 (0x324), region = 48  ;;  %p271_p3 = scmp.lt.s32.totalorder (!%p239_p2), %s1996_s28, 127  ;;  %2211 = vmatprep.subr.bf16.mxu0 (!%p239_p2), %v2427_v0  ;;  %2417 = vmatprep.subr.bf16.mxu1 (!%p239_p2), %v2427_v0  ;;  %v2428_v1 = vld [vmem:[%s3059_s3] sm:$0xff] (!%p239_p2)   ;;  %vm1870_vm3 = vcmask (!%p239_p2), 64512  }
   0x7   : > { %2212 = vmatpush3.bf16.msra.mxu0 (!%p239_p2), %v2427_v0  ;;  %2418 = vmatpush3.bf16.msra.mxu1 (!%p239_p2), %v2427_v0 }
   0x8   : > { %2277 = vmatprep.subr.bf16.mxu1 (!%p239_p2), %v2428_v1 }
   0xd   : > { %s3065_s28 = smov (!%p271_p3, %s1996_s28), 127 }
   0xe   : > { %s1997_s8 = sshll.u32 %s3065_s28, 3 }
   0xf   : > { %s2504_s11 = scalar_lea.vmem %s3056_s0, %s1997_s8  ;;  %s2860_s10 = scalar_lea.vmem %s3063_s7, %s1997_s8 }
  0x10   : > { %v283_v2 = vld [vmem:[%s2504_s11] sm:$0xff]  ;;  %v284_v3 = vld [vmem:[%s2504_s11 + $0x8] sm:$0xff]  ;;  %v285_v4 = vld [vmem:[%s2504_s11 + $0x10] sm:$0xff] }
  0x11   : > { %v347_v5 = vpack.c.bf16 %v284_v3, %v283_v2  ;;  %v286_v6 = vld [vmem:[%s2504_s11 + $0x18] sm:$0xff]  ;;  %v287_v7 = vld [vmem:[%s2504_s11 + $0x20] sm:$0xff]  ;;  %v288_v8 = vld [vmem:[%s2504_s11 + $0x28] sm:$0xff] }
  0x12   : > { %v348_v9 = vpack.c.bf16 %v286_v6, %v285_v4  ;;  %v349_v10 = vpack.c.bf16 %v288_v8, %v287_v7  ;;  %v289_v11 = vld [vmem:[%s2504_s11 + $0x30] sm:$0xff]  ;;  %v290_v12 = vld [vmem:[%s2504_s11 + $0x38] sm:$0xff]  ;;  %v291_v13 = vld [vmem:[%s2504_s11 + $0x40] sm:$0xff] }
  0x13   : > { %2213 = vmatprep.mubr.msk.bf16.mxu0 %vm394_vm0, %v347_v5  ;;  %v292_v14 = vld [vmem:[%s2504_s11 + $0x48] sm:$0xff]  ;;  %v350_v15 = vpack.c.bf16 %v290_v12, %v289_v11  ;;  %v315_v17 = vld [vmem:[%s2504_s11 + $0x100] sm:$0xff]  ;;  %v317_v19 = vld [vmem:[%s2504_s11 + $0x110] sm:$0xff] }
  0x14   : > { %2214 = vmatmul.mubr.msk.bf16.vlgmr.msra.gmra.mrb[0].mxu0 %vm394_vm0, %v348_v9  ;;  %v351_v16 = vpack.c.bf16 %v292_v14, %v291_v13  ;;  %v316_v18 = vld [vmem:[%s2504_s11 + $0x108] sm:$0xff]  ;;  %v318_v20 = vld [vmem:[%s2504_s11 + $0x118] sm:$0xff]  ;;  %v319_v23 = vld [vmem:[%s2504_s11 + $0x120] sm:$0xff] }
  0x15   : > { %2217 = vmatprep.mubr.msk.bf16.mxu0 %vm394_vm0, %v349_v10  ;;  %v363_v21 = vpack.c.bf16 %v316_v18, %v315_v17  ;;  %v364_v22 = vpack.c.bf16 %v318_v20, %v317_v19  ;;  %v320_v24 = vld [vmem:[%s2504_s11 + $0x128] sm:$0xff]  ;;  %v293_v25 = vld [vmem:[%s2504_s11 + $0x50] sm:$0xff]  ;;  %v294_v26 = vld [vmem:[%s2504_s11 + $0x58] sm:$0xff] }
  0x16   : > { %v365_v27 = vpack.c.bf16 %v320_v24, %v319_v23  ;;  %v295_v29 = vld [vmem:[%s2504_s11 + $0x60] sm:$0xff]  ;;  %v296_v30 = vld [vmem:[%s2504_s11 + $0x68] sm:$0xff]  ;;  %v352_v31 = vpack.c.bf16 %v294_v26, %v293_v25  ;;  %v321_v32 = vld [vmem:[%s2504_s11 + $0x130] sm:$0xff] }
  0x17   : > { %2245 = vmatprep.mubr.msk.bf16.mxu1 %vm394_vm0, %v363_v21  ;;  %v322_v33 = vld [vmem:[%s2504_s11 + $0x138] sm:$0xff]  ;;  %v353_v34 = vpack.c.bf16 %v296_v30, %v295_v29  ;;  %v323_v35 = vld [vmem:[%s2504_s11 + $0x140] sm:$0xff]  ;;  %v324_v36 = vld [vmem:[%s2504_s11 + $0x148] sm:$0xff] }
  0x18   : > { %2246 = vmatmul.mubr.msk.bf16.vlgmr.msra.gmra.mrb[0].mxu1 %vm394_vm0, %v364_v22  ;;  %v366_v37 = vpack.c.bf16 %v322_v33, %v321_v32  ;;  %v367_v38 = vpack.c.bf16 %v324_v36, %v323_v35  ;;  %v297_v39 = vld [vmem:[%s2504_s11 + $0x70] sm:$0xff]  ;;  %v298_v40 = vld [vmem:[%s2504_s11 + $0x78] sm:$0xff]  ;;  %v299_v41 = vld [vmem:[%s2504_s11 + $0x80] sm:$0xff] }
  0x19   : > { %2249 = vmatprep.mubr.msk.bf16.mxu1 %vm394_vm0, %v365_v27  ;;  %2278 = vmatpush3.bf16.msra.mxu1 %v2428_v1  ;;  %v300_v42 = vld [vmem:[%s2504_s11 + $0x88] sm:$0xff]  ;;  %v354_v43 = vpack.c.bf16 %v298_v40, %v297_v39  ;;  %v325_v44 = vld [vmem:[%s2504_s11 + $0x150] sm:$0xff]  ;;  %v326_v45 = vld [vmem:[%s2504_s11 + $0x158] sm:$0xff] }
  0x1a   : > { %2279 = vmatprep.subr.bf16.mxu1 %v2429_v28  ;;  %v355_v46 = vpack.c.bf16 %v300_v42, %v299_v41  ;;  %v327_v47 = vld [vmem:[%s2504_s11 + $0x160] sm:$0xff]  ;;  %v328_v48 = vld [vmem:[%s2504_s11 + $0x168] sm:$0xff]  ;;  %v368_v49 = vpack.c.bf16 %v326_v45, %v325_v44  ;;  %v301_v51 = vld [vmem:[%s2504_s11 + $0x90] sm:$0xff] }
  0x1b   : > { %v369_v50 = vpack.c.bf16 %v328_v48, %v327_v47  ;;  %v302_v52 = vld [vmem:[%s2504_s11 + $0x98] sm:$0xff]  ;;  %v303_v53 = vld [vmem:[%s2504_s11 + $0xa0] sm:$0xff]  ;;  %v304_v54 = vld [vmem:[%s2504_s11 + $0xa8] sm:$0xff] }
  0x1c   : > { %2218 = vmatmul.mubr.msk.bf16.gmra.mrb[4].mxu0 %vm394_vm0, %v350_v15  ;;  %v356_v55 = vpack.c.bf16 %v302_v52, %v301_v51  ;;  %v329_v56 = vld [vmem:[%s2504_s11 + $0x170] sm:$0xff]  ;;  %v330_v57 = vld [vmem:[%s2504_s11 + $0x178] sm:$0xff]  ;;  %v357_v58 = vpack.c.bf16 %v304_v54, %v303_v53  ;;  %v331_v59 = vld [vmem:[%s2504_s11 + $0x180] sm:$0xff] }
  0x1d   : > { %2221 = vmatprep.mubr.msk.bf16.mxu0 %vm394_vm0, %v351_v16  ;;  %2280 = vmatpush3.bf16.msra.mxu1 %v2429_v28  ;;  %v332_v60 = vld [vmem:[%s2504_s11 + $0x188] sm:$0xff]  ;;  %v370_v61 = vpack.c.bf16 %v330_v57, %v329_v56  ;;  %v305_v63 = vld [vmem:[%s2504_s11 + $0xb0] sm:$0xff]  ;;  %v306_v0 = vld [vmem:[%s2504_s11 + $0xb8] sm:$0xff] }
  0x1e   : > { %v371_v62 = vpack.c.bf16 %v332_v60, %v331_v59  ;;  %v307_v1 = vld [vmem:[%s2504_s11 + $0xc0] sm:$0xff]  ;;  %v308_v2 = vld [vmem:[%s2504_s11 + $0xc8] sm:$0xff]  ;;  %v358_v3 = vpack.c.bf16 %v306_v0, %v305_v63  ;;  %v333_v4 = vld [vmem:[%s2504_s11 + $0x190] sm:$0xff] }
  0x1f   : > { %v334_v5 = vld [vmem:[%s2504_s11 + $0x198] sm:$0xff]  ;;  %v359_v6 = vpack.c.bf16 %v308_v2, %v307_v1  ;;  %v335_v7 = vld [vmem:[%s2504_s11 + $0x1a0] sm:$0xff]  ;;  %v336_v8 = vld [vmem:[%s2504_s11 + $0x1a8] sm:$0xff] }
  0x20   : > { %2250 = vmatmul.mubr.msk.bf16.gmra.mrb[4].mxu1 %vm394_vm0, %v366_v37  ;;  %v372_v9 = vpack.c.bf16 %v334_v5, %v333_v4  ;;  %v373_v10 = vpack.c.bf16 %v336_v8, %v335_v7  ;;  %v309_v11 = vld [vmem:[%s2504_s11 + $0xd0] sm:$0xff]  ;;  %v310_v12 = vld [vmem:[%s2504_s11 + $0xd8] sm:$0xff]  ;;  %v311_v13 = vld [vmem:[%s2504_s11 + $0xe0] sm:$0xff] }
  0x21   : > { %2253 = vmatprep.mubr.msk.bf16.mxu1 %vm394_vm0, %v367_v38  ;;  %v312_v14 = vld [vmem:[%s2504_s11 + $0xe8] sm:$0xff]  ;;  %v360_v15 = vpack.c.bf16 %v310_v12, %v309_v11  ;;  %v337_v16 = vld [vmem:[%s2504_s11 + $0x1b0] sm:$0xff]  ;;  %v338_v17 = vld [vmem:[%s2504_s11 + $0x1b8] sm:$0xff] }
  0x22   : > { %v361_v18 = vpack.c.bf16 %v312_v14, %v311_v13  ;;  %v339_v19 = vld [vmem:[%s2504_s11 + $0x1c0] sm:$0xff]  ;;  %v340_v20 = vld [vmem:[%s2504_s11 + $0x1c8] sm:$0xff]  ;;  %v374_v21 = vpack.c.bf16 %v338_v17, %v337_v16  ;;  %v313_v23 = vld [vmem:[%s2504_s11 + $0xf0] sm:$0xff] }
  0x23   : > { %v375_v22 = vpack.c.bf16 %v340_v20, %v339_v19  ;;  %v314_v24 = vld [vmem:[%s2504_s11 + $0xf8] sm:$0xff]  ;;  %v341_v26 = vld [vmem:[%s2504_s11 + $0x1d0] sm:$0xff]  ;;  %v343_v28 = vld [vmem:[%s2504_s11 + $0x1e0] sm:$0xff] }
  0x24   : > { %2222 = vmatmul.mubr.msk.bf16.gmra.mrb[8].mxu0 %vm394_vm0, %v352_v31  ;;  %v362_v25 = vpack.c.bf16 %v314_v24, %v313_v23  ;;  %v342_v27 = vld [vmem:[%s2504_s11 + $0x1d8] sm:$0xff]  ;;  %v344_v29 = vld [vmem:[%s2504_s11 + $0x1e8] sm:$0xff]  ;;  %v345_v32 = vld [vmem:[%s2504_s11 + $0x1f0] sm:$0xff] }
  0x25   : > { %2225 = vmatprep.mubr.msk.bf16.mxu0 %vm394_vm0, %v353_v34  ;;  %v376_v30 = vpack.c.bf16 %v342_v27, %v341_v26  ;;  %v377_v31 = vpack.c.bf16 %v344_v29, %v343_v28  ;;  %v346_v33 = vld [vmem:[%s2504_s11 + $0x1f8] sm:$0xff]  ;;  %v2608_v35 = vld [vmem:[%s3058_s2] ss:$0 sm:$0xff]  ;;  %v2431_v44 = vld [vmem:[%s3061_s5 + $0x8] sm:$0xff]  }
  0x26   : > { %v378_v34 = vpack.c.bf16 %v346_v33, %v345_v32  ;;  %v2432_v51 = vld [vmem:[%s3061_s5 + $0x10] sm:$0xff]  }
  0x28   : > { %2254 = vmatmul.mubr.msk.bf16.gmra.mrb[8].mxu1 %vm394_vm0, %v368_v49 }
  0x29   : > { %2257 = vmatprep.mubr.msk.bf16.mxu1 %vm394_vm0, %v369_v50 }
  0x2c   : > { %2226 = vmatmul.mubr.msk.bf16.gmra.mrb[12].mxu0 %vm394_vm0, %v354_v43  ;;  %v2430_v43 = vld [vmem:[%s3061_s5] sm:$0xff]  }
  0x2d   : > { %2229 = vmatprep.mubr.msk.bf16.mxu0 %vm394_vm0, %v355_v46  ;;  %2345 = vmatprep.subr.bf16.mxu0 %v2430_v43 }
  0x2e   : > { %2346 = vmatpush3.bf16.msra.mxu0 %v2430_v43 }
  0x2f   : > { %2347 = vmatprep.subr.bf16.mxu0 %v2431_v44 }
  0x30   : > { %2258 = vmatmul.mubr.msk.bf16.gmra.mrb[12].mxu1 %vm394_vm0, %v370_v61  ;;  %v2433_v61 = vld [vmem:[%s3061_s5 + $0x18] sm:$0xff]  }
  0x31   : > { %2261 = vmatprep.mubr.msk.bf16.mxu1 %vm394_vm0, %v371_v62 }
  0x32   : > { %2348 = vmatpush3.bf16.msra.mxu0 %v2431_v44 }
  0x33   : > { %2349 = vmatprep.subr.bf16.mxu0 %v2432_v51 }
  0x34   : > { %2230 = vmatmul.mubr.msk.bf16.gmra.mrb[16].mxu0 %vm394_vm0, %v356_v55 }
  0x35   : > { %2233 = vmatprep.mubr.msk.bf16.mxu0 %vm394_vm0, %v357_v58 }
  0x36   : > { %2350 = vmatpush3.bf16.msra.mxu0 %v2432_v51 }
  0x37   : > { %2351 = vmatprep.subr.bf16.mxu0 %v2433_v61 }
  0x38   : > { %2262 = vmatmul.mubr.msk.bf16.gmra.mrb[16].mxu1 %vm394_vm0, %v372_v9 }
  0x39   : > { %2265 = vmatprep.mubr.msk.bf16.mxu1 %vm394_vm0, %v373_v10 }
  0x3a   : > { %2352 = vmatpush3.bf16.msra.mxu0 %v2433_v61 }
  0x3c   : > { %2234 = vmatmul.mubr.msk.bf16.gmra.mrb[20].mxu0 %vm394_vm0, %v358_v3 }
  0x3d   : > { %2237 = vmatprep.mubr.msk.bf16.mxu0 %vm394_vm0, %v359_v6 }
  0x40   : > { %2266 = vmatmul.mubr.msk.bf16.gmra.mrb[20].mxu1 %vm394_vm0, %v374_v21 }
  0x41   : > { %2269 = vmatprep.mubr.msk.bf16.mxu1 %vm394_vm0, %v375_v22 }
  0x44   : > { %2238 = vmatmul.mubr.msk.bf16.gmra.mrb[24].mxu0 %vm394_vm0, %v360_v15 }
  0x45   : > { %2241 = vmatprep.mubr.msk.bf16.mxu0 %vm394_vm0, %v361_v18 }
  0x48   : > { %2270 = vmatmul.mubr.msk.bf16.gmra.mrb[24].mxu1 %vm394_vm0, %v376_v30 }
  0x49   : > { %2273 = vmatprep.mubr.msk.bf16.mxu1 %vm394_vm0, %v377_v31 }
  0x4c   : > { %2242 = vmatmul.mubr.msk.bf16.gmra.mrb[28].mxu0 %vm394_vm0, %v362_v25 }
  0x50   : > { %2274 = vmatmul.mubr.msk.bf16.gmra.mrb[28].mxu1 %vm394_vm0, %v378_v34 }
  0xe7   : > { %v2215_v36 = vpop.f32.mrb[0].mxu0 }
  0xe8   : > { %v534_v37 = vadd.f32 %v2215_v36, %v2608_v35  ;;  %v525_v38 = vpop.f32.mrb[1].mxu0 }
  0xe9   : > { %v526_v39 = vadd.f32 %v2608_v35, %v525_v38  ;;  %v2216_v40 = vpop.f32.mrb[2].mxu0 }
  0xea   : > { %v537_v41 = vadd.f32 %v2216_v40, %v2608_v35  ;;  %v528_v42 = vpop.f32.mrb[3].mxu0  ;;  %v782_v46 = vmax.f32 %v534_v37, 0.0 }
  0xeb   : > { %v529_v45 = vadd.f32 %v2608_v35, %v528_v42  ;;  %v780_v48 = vmax.f32 %v526_v39, 0.0  ;;  %v2247_v60 = vpop.f32.mrb[0].mxu1 }
  0xec   : > { %v783_v47 = vmax.f32 %v537_v41, 0.0  ;;  %v662_v63 = vadd.f32 %v2247_v60, %v2608_v35  ;;  %v653_v0 = vpop.f32.mrb[1].mxu1 }
  0xed   : > { %v781_v49 = vmax.f32 %v529_v45, 0.0  ;;  %v654_v3 = vadd.f32 %v2608_v35, %v653_v0  ;;  %v2248_v4 = vpop.f32.mrb[2].mxu1 }
  0xee   : > { %v845_v50 = vpack.c.bf16 %v783_v47, %v782_v46  ;;  %v814_v7 = vmax.f32 %v662_v63, 0.0  ;;  %v665_v8 = vadd.f32 %v2248_v4, %v2608_v35  ;;  %v656_v9 = vpop.f32.mrb[3].mxu1 }
  0xef   : > { %v844_v52 = vpack.c.bf16 %v781_v49, %v780_v48  ;;  %v2219_v53 = vpop.f32.mrb[4].mxu0  ;;  %v812_v11 = vmax.f32 %v654_v3, 0.0  ;;  %v657_v12 = vadd.f32 %v2608_v35, %v656_v9 }
  0xf0   : > { %v550_v54 = vadd.f32 %v2219_v53, %v2608_v35  ;;  %v541_v55 = vpop.f32.mrb[5].mxu0  ;;  %v815_v15 = vmax.f32 %v665_v8, 0.0 }
  0xf1   : > { %v542_v56 = vadd.f32 %v2608_v35, %v541_v55  ;;  %v2220_v57 = vpop.f32.mrb[6].mxu0  ;;  %2281 = vmatprep.mubr.msk.bf16.mxu1 %vm899_vm1, %v844_v52  ;;  %v813_v18 = vmax.f32 %v657_v12, 0.0 }
  0xf2   : > { %v553_v58 = vadd.f32 %v2220_v57, %v2608_v35  ;;  %v544_v59 = vpop.f32.mrb[7].mxu0  ;;  %2282 = vmatmul.mubr.msk.bf16.vlgmr.msra.gmra.mrb[32].mxu1 %vm899_vm1, %v845_v50  ;;  %v786_v1 = vmax.f32 %v550_v54, 0.0  ;;  %v2639_v21 = vpack.c.bf16 %v815_v15, %v814_v7 }
  0xf3   : > { %v545_v62 = vadd.f32 %v2608_v35, %v544_v59  ;;  %v784_v5 = vmax.f32 %v542_v56, 0.0  ;;  %v2643_v24 = vpack.c.bf16 %v813_v18, %v812_v11  ;;  %v2251_v25 = vpop.f32.mrb[4].mxu1 }
  0xf4   : > { %v787_v2 = vmax.f32 %v553_v58, 0.0  ;;  %v678_v27 = vadd.f32 %v2251_v25, %v2608_v35  ;;  %v669_v28 = vpop.f32.mrb[5].mxu1 }
  0xf5   : > { %v785_v6 = vmax.f32 %v545_v62, 0.0  ;;  %v670_v31 = vadd.f32 %v2608_v35, %v669_v28  ;;  %v2252_v32 = vpop.f32.mrb[6].mxu1 }
  0xf6   : > { %v847_v10 = vpack.c.bf16 %v787_v2, %v786_v1  ;;  %v818_v36 = vmax.f32 %v678_v27, 0.0  ;;  %v681_v37 = vadd.f32 %v2252_v32, %v2608_v35  ;;  %v672_v38 = vpop.f32.mrb[7].mxu1 }
  0xf7   : > { %v846_v13 = vpack.c.bf16 %v785_v6, %v784_v5  ;;  %v2223_v14 = vpop.f32.mrb[8].mxu0  ;;  %v816_v40 = vmax.f32 %v670_v31, 0.0  ;;  %v673_v41 = vadd.f32 %v2608_v35, %v672_v38 }
  0xf8   : > { %v566_v16 = vadd.f32 %v2223_v14, %v2608_v35  ;;  %v557_v17 = vpop.f32.mrb[9].mxu0  ;;  %v819_v44 = vmax.f32 %v681_v37, 0.0 }
  0xf9   : > { %v558_v19 = vadd.f32 %v2608_v35, %v557_v17  ;;  %v2224_v20 = vpop.f32.mrb[10].mxu0  ;;  %2285 = vmatprep.mubr.msk.bf16.mxu1 %vm899_vm1, %v846_v13  ;;  %v817_v47 = vmax.f32 %v673_v41, 0.0 }
  0xfa   : > { %v569_v22 = vadd.f32 %v2224_v20, %v2608_v35  ;;  %v560_v23 = vpop.f32.mrb[11].mxu0  ;;  %2286 = vmatmul.mubr.msk.bf16.gmra.mrb[36].mxu1 %vm899_vm1, %v847_v10  ;;  %v790_v29 = vmax.f32 %v566_v16, 0.0  ;;  %v2653_v50 = vpack.c.bf16 %v819_v44, %v818_v36 }
  0xfb   : > { %v561_v26 = vadd.f32 %v2608_v35, %v560_v23  ;;  %v788_v33 = vmax.f32 %v558_v19, 0.0  ;;  %v2657_v53 = vpack.c.bf16 %v817_v47, %v816_v40  ;;  %v2255_v54 = vpop.f32.mrb[8].mxu1 }
  0xfc   : > { %v791_v30 = vmax.f32 %v569_v22, 0.0  ;;  %v694_v56 = vadd.f32 %v2255_v54, %v2608_v35  ;;  %v685_v57 = vpop.f32.mrb[9].mxu1 }
  0xfd   : > { %v789_v34 = vmax.f32 %v561_v26, 0.0  ;;  %v686_v60 = vadd.f32 %v2608_v35, %v685_v57  ;;  %v2256_v61 = vpop.f32.mrb[10].mxu1 }
  0xfe   : > { %v849_v39 = vpack.c.bf16 %v791_v30, %v790_v29  ;;  %v822_v0 = vmax.f32 %v694_v56, 0.0  ;;  %v697_v1 = vadd.f32 %v2256_v61, %v2608_v35  ;;  %v688_v2 = vpop.f32.mrb[11].mxu1 }
  0xff   : > { %v848_v42 = vpack.c.bf16 %v789_v34, %v788_v33  ;;  %v2227_v43 = vpop.f32.mrb[12].mxu0  ;;  %v820_v4 = vmax.f32 %v686_v60, 0.0  ;;  %v689_v5 = vadd.f32 %v2608_v35, %v688_v2 }
 0x100   : > { %v582_v45 = vadd.f32 %v2227_v43, %v2608_v35  ;;  %v573_v46 = vpop.f32.mrb[13].mxu0  ;;  %v823_v8 = vmax.f32 %v697_v1, 0.0 }
 0x101   : > { %v574_v48 = vadd.f32 %v2608_v35, %v573_v46  ;;  %v2228_v49 = vpop.f32.mrb[14].mxu0  ;;  %2289 = vmatprep.mubr.msk.bf16.mxu1 %vm899_vm1, %v848_v42  ;;  %v821_v11 = vmax.f32 %v689_v5, 0.0 }
 0x102   : > { %v585_v51 = vadd.f32 %v2228_v49, %v2608_v35  ;;  %v576_v52 = vpop.f32.mrb[15].mxu0  ;;  %2290 = vmatmul.mubr.msk.bf16.gmra.mrb[40].mxu1 %vm899_vm1, %v849_v39  ;;  %v794_v58 = vmax.f32 %v582_v45, 0.0  ;;  %v2667_v14 = vpack.c.bf16 %v823_v8, %v822_v0 }
 0x103   : > { %v577_v55 = vadd.f32 %v2608_v35, %v576_v52  ;;  %v792_v62 = vmax.f32 %v574_v48, 0.0  ;;  %v2671_v17 = vpack.c.bf16 %v821_v11, %v820_v4  ;;  %v2259_v18 = vpop.f32.mrb[12].mxu1 }
 0x104   : > { %v795_v59 = vmax.f32 %v585_v51, 0.0  ;;  %v710_v20 = vadd.f32 %v2259_v18, %v2608_v35  ;;  %v701_v22 = vpop.f32.mrb[13].mxu1 }
 0x105   : > { %v793_v63 = vmax.f32 %v577_v55, 0.0  ;;  %v702_v26 = vadd.f32 %v2608_v35, %v701_v22  ;;  %v2260_v27 = vpop.f32.mrb[14].mxu1 }
 0x106   : > { %v851_v3 = vpack.c.bf16 %v795_v59, %v794_v58  ;;  %v826_v30 = vmax.f32 %v710_v20, 0.0  ;;  %v713_v31 = vadd.f32 %v2260_v27, %v2608_v35  ;;  %v704_v32 = vpop.f32.mrb[15].mxu1 }
 0x107   : > { %v850_v6 = vpack.c.bf16 %v793_v63, %v792_v62  ;;  %v2231_v7 = vpop.f32.mrb[16].mxu0  ;;  %v824_v34 = vmax.f32 %v702_v26, 0.0  ;;  %v705_v36 = vadd.f32 %v2608_v35, %v704_v32 }
 0x108   : > { %v598_v9 = vadd.f32 %v2231_v7, %v2608_v35  ;;  %v589_v10 = vpop.f32.mrb[17].mxu0  ;;  %v827_v39 = vmax.f32 %v713_v31, 0.0 }
 0x109   : > { %v590_v12 = vadd.f32 %v2608_v35, %v589_v10  ;;  %v2232_v13 = vpop.f32.mrb[18].mxu0  ;;  %2293 = vmatprep.mubr.msk.bf16.mxu1 %vm899_vm1, %v850_v6  ;;  %v825_v42 = vmax.f32 %v705_v36, 0.0 }
 0x10a   : > { %v601_v15 = vadd.f32 %v2232_v13, %v2608_v35  ;;  %v592_v16 = vpop.f32.mrb[19].mxu0  ;;  %2294 = vmatmul.mubr.msk.bf16.gmra.mrb[44].mxu1 %vm899_vm1, %v851_v3  ;;  %v798_v23 = vmax.f32 %v598_v9, 0.0  ;;  %v2681_v45 = vpack.c.bf16 %v827_v39, %v826_v30 }
 0x10b   : > { %v593_v19 = vadd.f32 %v2608_v35, %v592_v16  ;;  %v796_v28 = vmax.f32 %v590_v12, 0.0  ;;  %v2685_v48 = vpack.c.bf16 %v825_v42, %v824_v34  ;;  %v2263_v49 = vpop.f32.mrb[16].mxu1 }
 0x10c   : > { %v799_v25 = vmax.f32 %v601_v15, 0.0  ;;  %v726_v52 = vadd.f32 %v2263_v49, %v2608_v35  ;;  %v717_v54 = vpop.f32.mrb[17].mxu1 }
 0x10d   : > { %v797_v29 = vmax.f32 %v593_v19, 0.0  ;;  %v718_v57 = vadd.f32 %v2608_v35, %v717_v54  ;;  %v2264_v58 = vpop.f32.mrb[18].mxu1 }
 0x10e   : > { %v853_v33 = vpack.c.bf16 %v799_v25, %v798_v23  ;;  %v830_v61 = vmax.f32 %v726_v52, 0.0  ;;  %v729_v62 = vadd.f32 %v2264_v58, %v2608_v35  ;;  %v720_v63 = vpop.f32.mrb[19].mxu1 }
 0x10f   : > { %v852_v37 = vpack.c.bf16 %v797_v29, %v796_v28  ;;  %v2235_v38 = vpop.f32.mrb[20].mxu0  ;;  %v828_v1 = vmax.f32 %v718_v57, 0.0  ;;  %v721_v2 = vadd.f32 %v2608_v35, %v720_v63 }
 0x110   : > { %v614_v40 = vadd.f32 %v2235_v38, %v2608_v35  ;;  %v605_v41 = vpop.f32.mrb[21].mxu0  ;;  %v831_v5 = vmax.f32 %v729_v62, 0.0 }
 0x111   : > { %v606_v43 = vadd.f32 %v2608_v35, %v605_v41  ;;  %v2236_v44 = vpop.f32.mrb[22].mxu0  ;;  %2297 = vmatprep.mubr.msk.bf16.mxu1 %vm899_vm1, %v852_v37  ;;  %v829_v8 = vmax.f32 %v721_v2, 0.0 }
 0x112   : > { %v617_v46 = vadd.f32 %v2236_v44, %v2608_v35  ;;  %v608_v47 = vpop.f32.mrb[23].mxu0  ;;  %2298 = vmatmul.mubr.msk.bf16.gmra.mrb[48].mxu1 %vm899_vm1, %v853_v33  ;;  %v802_v55 = vmax.f32 %v614_v40, 0.0  ;;  %v2695_v11 = vpack.c.bf16 %v831_v5, %v830_v61 }
 0x113   : > { %v609_v51 = vadd.f32 %v2608_v35, %v608_v47  ;;  %v800_v59 = vmax.f32 %v606_v43, 0.0  ;;  %v2699_v15 = vpack.c.bf16 %v829_v8, %v828_v1  ;;  %v2267_v16 = vpop.f32.mrb[20].mxu1 }
 0x114   : > { %v803_v56 = vmax.f32 %v617_v46, 0.0  ;;  %v742_v19 = vadd.f32 %v2267_v16, %v2608_v35  ;;  %v733_v20 = vpop.f32.mrb[21].mxu1 }
 0x115   : > { %v801_v60 = vmax.f32 %v609_v51, 0.0  ;;  %v734_v25 = vadd.f32 %v2608_v35, %v733_v20  ;;  %v2268_v26 = vpop.f32.mrb[22].mxu1 }
 0x116   : > { %v855_v0 = vpack.c.bf16 %v803_v56, %v802_v55  ;;  %v834_v29 = vmax.f32 %v742_v19, 0.0  ;;  %v745_v30 = vadd.f32 %v2268_v26, %v2608_v35  ;;  %v736_v31 = vpop.f32.mrb[23].mxu1 }
 0x117   : > { %v854_v3 = vpack.c.bf16 %v801_v60, %v800_v59  ;;  %v2239_v4 = vpop.f32.mrb[24].mxu0  ;;  %v832_v33 = vmax.f32 %v734_v25, 0.0  ;;  %v737_v34 = vadd.f32 %v2608_v35, %v736_v31 }
 0x118   : > { %v630_v6 = vadd.f32 %v2239_v4, %v2608_v35  ;;  %v621_v7 = vpop.f32.mrb[25].mxu0  ;;  %v835_v38 = vmax.f32 %v745_v30, 0.0 }
 0x119   : > { %v622_v9 = vadd.f32 %v2608_v35, %v621_v7  ;;  %v2240_v10 = vpop.f32.mrb[26].mxu0  ;;  %2301 = vmatprep.mubr.msk.bf16.mxu1 %vm899_vm1, %v854_v3  ;;  %v833_v41 = vmax.f32 %v737_v34, 0.0 }
 0x11a   : > { %v633_v12 = vadd.f32 %v2240_v10, %v2608_v35  ;;  %v624_v13 = vpop.f32.mrb[27].mxu0  ;;  %2302 = vmatmul.mubr.msk.bf16.gmra.mrb[52].mxu1 %vm899_vm1, %v855_v0  ;;  %v806_v22 = vmax.f32 %v630_v6, 0.0  ;;  %v871_v44 = vpack.c.bf16 %v835_v38, %v834_v29 }
 0x11b   : > { %v625_v18 = vadd.f32 %v2608_v35, %v624_v13  ;;  %v804_v27 = vmax.f32 %v622_v9, 0.0  ;;  %v870_v49 = vpack.c.bf16 %v833_v41, %v832_v33  ;;  %v2271_v51 = vpop.f32.mrb[24].mxu1 }
 0x11c   : > { %v807_v23 = vmax.f32 %v633_v12, 0.0  ;;  %v758_v54 = vadd.f32 %v2271_v51, %v2608_v35  ;;  %v749_v55 = vpop.f32.mrb[25].mxu1 }
 0x11d   : > { %v805_v28 = vmax.f32 %v625_v18, 0.0  ;;  %v750_v58 = vadd.f32 %v2608_v35, %v749_v55  ;;  %v2272_v59 = vpop.f32.mrb[26].mxu1 }
 0x11e   : > { %v857_v32 = vpack.c.bf16 %v807_v23, %v806_v22  ;;  %v838_v62 = vmax.f32 %v758_v54, 0.0  ;;  %v761_v63 = vadd.f32 %v2272_v59, %v2608_v35  ;;  %v752_v0 = vpop.f32.mrb[27].mxu1 }
 0x11f   : > { %v856_v36 = vpack.c.bf16 %v805_v28, %v804_v27  ;;  %v2243_v37 = vpop.f32.mrb[28].mxu0  ;;  %v836_v2 = vmax.f32 %v750_v58, 0.0  ;;  %v753_v3 = vadd.f32 %v2608_v35, %v752_v0 }
 0x120   : > { %v646_v39 = vadd.f32 %v2243_v37, %v2608_v35  ;;  %v637_v40 = vpop.f32.mrb[29].mxu0  ;;  %v839_v5 = vmax.f32 %v761_v63, 0.0 }
 0x121   : > { %v638_v42 = vadd.f32 %v2608_v35, %v637_v40  ;;  %v2244_v43 = vpop.f32.mrb[30].mxu0  ;;  %2305 = vmatprep.mubr.msk.bf16.mxu1 %vm899_vm1, %v856_v36  ;;  %v837_v6 = vmax.f32 %v753_v3, 0.0 }
 0x122   : > { %v649_v46 = vadd.f32 %v2244_v43, %v2608_v35  ;;  %v640_v47 = vpop.f32.mrb[31].mxu0  ;;  %2306 = vmatmul.mubr.msk.bf16.gmra.mrb[56].mxu1 %vm899_vm1, %v857_v32  ;;  %v810_v56 = vmax.f32 %v646_v39, 0.0  ;;  %v873_v7 = vpack.c.bf16 %v839_v5, %v838_v62 }
 0x123   : > { %v641_v52 = vadd.f32 %v2608_v35, %v640_v47  ;;  %v808_v60 = vmax.f32 %v638_v42, 0.0  ;;  %v872_v8 = vpack.c.bf16 %v837_v6, %v836_v2  ;;  %v2275_v9 = vpop.f32.mrb[28].mxu1 }
 0x124   : > { %v811_v57 = vmax.f32 %v649_v46, 0.0  ;;  %v774_v10 = vadd.f32 %v2275_v9, %v2608_v35  ;;  %v765_v12 = vpop.f32.mrb[29].mxu1 }
 0x125   : > { %v809_v61 = vmax.f32 %v641_v52, 0.0  ;;  %v766_v13 = vadd.f32 %v2608_v35, %v765_v12  ;;  %v2276_v16 = vpop.f32.mrb[30].mxu1 }
 0x126   : > { %v859_v1 = vpack.c.bf16 %v811_v57, %v810_v56  ;;  %v842_v18 = vmax.f32 %v774_v10, 0.0  ;;  %v777_v19 = vadd.f32 %v2276_v16, %v2608_v35  ;;  %v768_v20 = vpop.f32.mrb[31].mxu1 }
 0x127   : > { %v858_v4 = vpack.c.bf16 %v809_v61, %v808_v60  ;;  %v840_v22 = vmax.f32 %v766_v13, 0.0  ;;  %v769_v23 = vadd.f32 %v2608_v35, %v768_v20  ;;  %v2751_v35 = vld [vmem:[%s3060_s4] ss:$0 sm:$0xff] }
 0x128   : > { %v843_v25 = vmax.f32 %v777_v19, 0.0 }
 0x129   : > { %2309 = vmatprep.mubr.msk.bf16.mxu1 %vm899_vm1, %v858_v4  ;;  %v841_v26 = vmax.f32 %v769_v23, 0.0 }
 0x12a   : > { %2310 = vmatmul.mubr.msk.bf16.gmra.mrb[60].mxu1 %vm899_vm1, %v859_v1  ;;  %v875_v27 = vpack.c.bf16 %v843_v25, %v842_v18 }
 0x12b   : > { %2313 = vmatprep.mubr.msk.bf16.mxu1 %vm899_vm1, %v2643_v24  ;;  %v874_v24 = vpack.c.bf16 %v841_v26, %v840_v22 }
 0x132   : > { %2314 = vmatmul.mubr.msk.bf16.gmra.mrb[64].mxu1 %vm899_vm1, %v2639_v21 }
 0x133   : > { %2317 = vmatprep.mubr.msk.bf16.mxu1 %vm899_vm1, %v2657_v53 }
 0x13a   : > { %2318 = vmatmul.mubr.msk.bf16.gmra.mrb[68].mxu1 %vm899_vm1, %v2653_v50 }
 0x13b   : > { %2321 = vmatprep.mubr.msk.bf16.mxu1 %vm899_vm1, %v2671_v17 }
 0x142   : > { %2322 = vmatmul.mubr.msk.bf16.gmra.mrb[72].mxu1 %vm899_vm1, %v2667_v14 }
 0x143   : > { %2325 = vmatprep.mubr.msk.bf16.mxu1 %vm899_vm1, %v2685_v48 }
 0x14a   : > { %2326 = vmatmul.mubr.msk.bf16.gmra.mrb[76].mxu1 %vm899_vm1, %v2681_v45 }
 0x14b   : > { %2329 = vmatprep.mubr.msk.bf16.mxu1 %vm899_vm1, %v2699_v15 }
 0x152   : > { %2330 = vmatmul.mubr.msk.bf16.gmra.mrb[80].mxu1 %vm899_vm1, %v2695_v11 }
 0x153   : > { %2333 = vmatprep.mubr.msk.bf16.mxu1 %vm899_vm1, %v870_v49 }
 0x15a   : > { %2334 = vmatmul.mubr.msk.bf16.gmra.mrb[84].mxu1 %vm899_vm1, %v871_v44 }
 0x15b   : > { %2337 = vmatprep.mubr.msk.bf16.mxu1 %vm899_vm1, %v872_v8 }
 0x162   : > { %2338 = vmatmul.mubr.msk.bf16.gmra.mrb[88].mxu1 %vm899_vm1, %v873_v7 }
 0x163   : > { %2341 = vmatprep.mubr.msk.bf16.mxu1 %vm899_vm1, %v874_v24 }
 0x16a   : > { %2342 = vmatmul.mubr.msk.bf16.gmra.mrb[92].mxu1 %vm899_vm1, %v875_v27 }
 0x1c5   : > { %v2283_v21 = vpop.f32.mrb[32].mxu1 }
 0x1c6   : > { %v1039_v50 = vadd.f32 %v2283_v21, %v2751_v35  ;;  %v1030_v53 = vpop.f32.mrb[33].mxu1 }
 0x1c7   : > { %v1031_v14 = vadd.f32 %v2751_v35, %v1030_v53  ;;  %v2284_v17 = vpop.f32.mrb[34].mxu1 }
 0x1c8   : > { %v1042_v45 = vadd.f32 %v2284_v17, %v2751_v35  ;;  %v1033_v48 = vpop.f32.mrb[35].mxu1  ;;  %v1287_v15 = vmax.f32 %v1039_v50, 0.0 }
 0x1c9   : > { %v1034_v11 = vadd.f32 %v2751_v35, %v1033_v48  ;;  %v1285_v29 = vmax.f32 %v1031_v14, 0.0 }
 0x1ca   : > { %v1288_v28 = vmax.f32 %v1042_v45, 0.0 }
 0x1cb   : > { %v1286_v30 = vmax.f32 %v1034_v11, 0.0 }
 0x1cc   : > { %v1350_v31 = vpack.c.bf16 %v1288_v28, %v1287_v15 }
 0x1cd   : > { %v1349_v32 = vpack.c.bf16 %v1286_v30, %v1285_v29  ;;  %v2287_v33 = vpop.f32.mrb[36].mxu1 }
 0x1ce   : > { %v1055_v34 = vadd.f32 %v2287_v33, %v2751_v35  ;;  %v1046_v36 = vpop.f32.mrb[37].mxu1 }
 0x1cf   : > { %v1047_v37 = vadd.f32 %v2751_v35, %v1046_v36  ;;  %v2288_v38 = vpop.f32.mrb[38].mxu1  ;;  %2353 = vmatprep.mubr.msk.bf16.mxu0 %vm1420_vm2, %v1349_v32 }
 0x1d0   : > { %v1058_v39 = vadd.f32 %v2288_v38, %v2751_v35  ;;  %v1049_v40 = vpop.f32.mrb[39].mxu1  ;;  %2354 = vmatmul.mubr.msk.bf16.vlgmr.msra.gmra.mrb[32].mxu0 %vm1420_vm2, %v1350_v31  ;;  %v1291_v42 = vmax.f32 %v1055_v34, 0.0 }
 0x1d1   : > { %v1050_v41 = vadd.f32 %v2751_v35, %v1049_v40  ;;  %v1289_v44 = vmax.f32 %v1047_v37, 0.0 }
 0x1d2   : > { %v1292_v43 = vmax.f32 %v1058_v39, 0.0 }
 0x1d3   : > { %v1290_v46 = vmax.f32 %v1050_v41, 0.0 }
 0x1d4   : > { %v1352_v47 = vpack.c.bf16 %v1292_v43, %v1291_v42 }
 0x1d5   : > { %v1351_v49 = vpack.c.bf16 %v1290_v46, %v1289_v44  ;;  %v2291_v51 = vpop.f32.mrb[40].mxu1 }
 0x1d6   : > { %v1071_v52 = vadd.f32 %v2291_v51, %v2751_v35  ;;  %v1062_v54 = vpop.f32.mrb[41].mxu1 }
 0x1d7   : > { %v1063_v55 = vadd.f32 %v2751_v35, %v1062_v54  ;;  %v2292_v56 = vpop.f32.mrb[42].mxu1  ;;  %2357 = vmatprep.mubr.msk.bf16.mxu0 %vm1420_vm2, %v1351_v49 }
 0x1d8   : > { %v1074_v57 = vadd.f32 %v2292_v56, %v2751_v35  ;;  %v1065_v58 = vpop.f32.mrb[43].mxu1  ;;  %2358 = vmatmul.mubr.msk.bf16.gmra.mrb[36].mxu0 %vm1420_vm2, %v1352_v47  ;;  %v1295_v60 = vmax.f32 %v1071_v52, 0.0 }
 0x1d9   : > { %v1066_v59 = vadd.f32 %v2751_v35, %v1065_v58  ;;  %v1293_v62 = vmax.f32 %v1063_v55, 0.0 }
 0x1da   : > { %v1296_v61 = vmax.f32 %v1074_v57, 0.0 }
 0x1db   : > { %v1294_v63 = vmax.f32 %v1066_v59, 0.0 }
 0x1dc   : > { %v1354_v0 = vpack.c.bf16 %v1296_v61, %v1295_v60 }
 0x1dd   : > { %v1353_v1 = vpack.c.bf16 %v1294_v63, %v1293_v62  ;;  %v2295_v2 = vpop.f32.mrb[44].mxu1 }
 0x1de   : > { %v1087_v3 = vadd.f32 %v2295_v2, %v2751_v35  ;;  %v1078_v4 = vpop.f32.mrb[45].mxu1 }
 0x1df   : > { %v1079_v5 = vadd.f32 %v2751_v35, %v1078_v4  ;;  %v2296_v6 = vpop.f32.mrb[46].mxu1  ;;  %2361 = vmatprep.mubr.msk.bf16.mxu0 %vm1420_vm2, %v1353_v1 }
 0x1e0   : > { %v1090_v7 = vadd.f32 %v2296_v6, %v2751_v35  ;;  %v1081_v8 = vpop.f32.mrb[47].mxu1  ;;  %2362 = vmatmul.mubr.msk.bf16.gmra.mrb[40].mxu0 %vm1420_vm2, %v1354_v0  ;;  %v1299_v10 = vmax.f32 %v1087_v3, 0.0 }
 0x1e1   : > { %v1082_v9 = vadd.f32 %v2751_v35, %v1081_v8  ;;  %v1297_v13 = vmax.f32 %v1079_v5, 0.0 }
 0x1e2   : > { %v1300_v12 = vmax.f32 %v1090_v7, 0.0 }
 0x1e3   : > { %v1298_v16 = vmax.f32 %v1082_v9, 0.0 }
 0x1e4   : > { %v1356_v18 = vpack.c.bf16 %v1300_v12, %v1299_v10 }
 0x1e5   : > { %v1355_v19 = vpack.c.bf16 %v1298_v16, %v1297_v13  ;;  %v2299_v20 = vpop.f32.mrb[48].mxu1 }
 0x1e6   : > { %v1103_v22 = vadd.f32 %v2299_v20, %v2751_v35  ;;  %v1094_v23 = vpop.f32.mrb[49].mxu1 }
 0x1e7   : > { %v1095_v25 = vadd.f32 %v2751_v35, %v1094_v23  ;;  %v2300_v26 = vpop.f32.mrb[50].mxu1  ;;  %2365 = vmatprep.mubr.msk.bf16.mxu0 %vm1420_vm2, %v1355_v19 }
 0x1e8   : > { %v1106_v27 = vadd.f32 %v2300_v26, %v2751_v35  ;;  %v1097_v24 = vpop.f32.mrb[51].mxu1  ;;  %2366 = vmatmul.mubr.msk.bf16.gmra.mrb[44].mxu0 %vm1420_vm2, %v1356_v18  ;;  %v1303_v50 = vmax.f32 %v1103_v22, 0.0 }
 0x1e9   : > { %v1098_v21 = vadd.f32 %v2751_v35, %v1097_v24  ;;  %v1301_v14 = vmax.f32 %v1095_v25, 0.0 }
 0x1ea   : > { %v1304_v53 = vmax.f32 %v1106_v27, 0.0 }
 0x1eb   : > { %v1302_v17 = vmax.f32 %v1098_v21, 0.0 }
 0x1ec   : > { %v1358_v45 = vpack.c.bf16 %v1304_v53, %v1303_v50 }
 0x1ed   : > { %v1357_v48 = vpack.c.bf16 %v1302_v17, %v1301_v14  ;;  %v2303_v11 = vpop.f32.mrb[52].mxu1 }
 0x1ee   : > { %v1119_v15 = vadd.f32 %v2303_v11, %v2751_v35  ;;  %v1110_v28 = vpop.f32.mrb[53].mxu1 }
 0x1ef   : > { %v1111_v29 = vadd.f32 %v2751_v35, %v1110_v28  ;;  %v2304_v30 = vpop.f32.mrb[54].mxu1  ;;  %2369 = vmatprep.mubr.msk.bf16.mxu0 %vm1420_vm2, %v1357_v48 }
 0x1f0   : > { %v1122_v31 = vadd.f32 %v2304_v30, %v2751_v35  ;;  %v1113_v32 = vpop.f32.mrb[55].mxu1  ;;  %2370 = vmatmul.mubr.msk.bf16.gmra.mrb[48].mxu0 %vm1420_vm2, %v1358_v45  ;;  %v1307_v34 = vmax.f32 %v1119_v15, 0.0 }
 0x1f1   : > { %v1114_v33 = vadd.f32 %v2751_v35, %v1113_v32  ;;  %v1305_v37 = vmax.f32 %v1111_v29, 0.0 }
 0x1f2   : > { %v1308_v36 = vmax.f32 %v1122_v31, 0.0 }
 0x1f3   : > { %v1306_v38 = vmax.f32 %v1114_v33, 0.0 }
 0x1f4   : > { %v1360_v39 = vpack.c.bf16 %v1308_v36, %v1307_v34 }
 0x1f5   : > { %v1359_v40 = vpack.c.bf16 %v1306_v38, %v1305_v37  ;;  %v2307_v41 = vpop.f32.mrb[56].mxu1 }
 0x1f6   : > { %v1135_v42 = vadd.f32 %v2307_v41, %v2751_v35  ;;  %v1126_v43 = vpop.f32.mrb[57].mxu1 }
 0x1f7   : > { %v1127_v44 = vadd.f32 %v2751_v35, %v1126_v43  ;;  %v2308_v46 = vpop.f32.mrb[58].mxu1  ;;  %2373 = vmatprep.mubr.msk.bf16.mxu0 %vm1420_vm2, %v1359_v40 }
 0x1f8   : > { %v1138_v47 = vadd.f32 %v2308_v46, %v2751_v35  ;;  %v1129_v49 = vpop.f32.mrb[59].mxu1  ;;  %2374 = vmatmul.mubr.msk.bf16.gmra.mrb[52].mxu0 %vm1420_vm2, %v1360_v39  ;;  %v1311_v52 = vmax.f32 %v1135_v42, 0.0 }
 0x1f9   : > { %v1130_v51 = vadd.f32 %v2751_v35, %v1129_v49  ;;  %v1309_v55 = vmax.f32 %v1127_v44, 0.0 }
 0x1fa   : > { %v1312_v54 = vmax.f32 %v1138_v47, 0.0 }
 0x1fb   : > { %v1310_v56 = vmax.f32 %v1130_v51, 0.0 }
 0x1fc   : > { %v1362_v57 = vpack.c.bf16 %v1312_v54, %v1311_v52 }
 0x1fd   : > { %v1361_v58 = vpack.c.bf16 %v1310_v56, %v1309_v55  ;;  %v2311_v59 = vpop.f32.mrb[60].mxu1 }
 0x1fe   : > { %v1151_v60 = vadd.f32 %v2311_v59, %v2751_v35  ;;  %v1142_v61 = vpop.f32.mrb[61].mxu1 }
 0x1ff   : > { %v1143_v62 = vadd.f32 %v2751_v35, %v1142_v61  ;;  %v2312_v63 = vpop.f32.mrb[62].mxu1  ;;  %2377 = vmatprep.mubr.msk.bf16.mxu0 %vm1420_vm2, %v1361_v58 }
 0x200   : > { %v1154_v0 = vadd.f32 %v2312_v63, %v2751_v35  ;;  %v1145_v1 = vpop.f32.mrb[63].mxu1  ;;  %2378 = vmatmul.mubr.msk.bf16.gmra.mrb[56].mxu0 %vm1420_vm2, %v1362_v57  ;;  %v1315_v3 = vmax.f32 %v1151_v60, 0.0 }
 0x201   : > { %v1146_v2 = vadd.f32 %v2751_v35, %v1145_v1  ;;  %v1313_v5 = vmax.f32 %v1143_v62, 0.0 }
 0x202   : > { %v1316_v4 = vmax.f32 %v1154_v0, 0.0 }
 0x203   : > { %v1314_v6 = vmax.f32 %v1146_v2, 0.0 }
 0x204   : > { %v1364_v7 = vpack.c.bf16 %v1316_v4, %v1315_v3 }
 0x205   : > { %v1363_v8 = vpack.c.bf16 %v1314_v6, %v1313_v5  ;;  %v2315_v9 = vpop.f32.mrb[64].mxu1 }
 0x206   : > { %v1167_v10 = vadd.f32 %v2315_v9, %v2751_v35  ;;  %v1158_v12 = vpop.f32.mrb[65].mxu1 }
 0x207   : > { %v1159_v13 = vadd.f32 %v2751_v35, %v1158_v12  ;;  %v2316_v16 = vpop.f32.mrb[66].mxu1  ;;  %2381 = vmatprep.mubr.msk.bf16.mxu0 %vm1420_vm2, %v1363_v8 }
 0x208   : > { %v1170_v18 = vadd.f32 %v2316_v16, %v2751_v35  ;;  %v1161_v19 = vpop.f32.mrb[67].mxu1  ;;  %2382 = vmatmul.mubr.msk.bf16.gmra.mrb[60].mxu0 %vm1420_vm2, %v1364_v7  ;;  %v1319_v22 = vmax.f32 %v1167_v10, 0.0 }
 0x209   : > { %v1162_v20 = vadd.f32 %v2751_v35, %v1161_v19  ;;  %v1317_v25 = vmax.f32 %v1159_v13, 0.0 }
 0x20a   : > { %v1320_v23 = vmax.f32 %v1170_v18, 0.0 }
 0x20b   : > { %v1318_v26 = vmax.f32 %v1162_v20, 0.0 }
 0x20c   : > { %v1366_v27 = vpack.c.bf16 %v1320_v23, %v1319_v22 }
 0x20d   : > { %v1365_v24 = vpack.c.bf16 %v1318_v26, %v1317_v25  ;;  %v2319_v21 = vpop.f32.mrb[68].mxu1 }
 0x20e   : > { %v1183_v50 = vadd.f32 %v2319_v21, %v2751_v35  ;;  %v1174_v53 = vpop.f32.mrb[69].mxu1 }
 0x20f   : > { %v1175_v14 = vadd.f32 %v2751_v35, %v1174_v53  ;;  %v2320_v17 = vpop.f32.mrb[70].mxu1  ;;  %2385 = vmatprep.mubr.msk.bf16.mxu0 %vm1420_vm2, %v1365_v24 }
 0x210   : > { %v1186_v45 = vadd.f32 %v2320_v17, %v2751_v35  ;;  %v1177_v48 = vpop.f32.mrb[71].mxu1  ;;  %2386 = vmatmul.mubr.msk.bf16.gmra.mrb[64].mxu0 %vm1420_vm2, %v1366_v27  ;;  %v1323_v15 = vmax.f32 %v1183_v50, 0.0 }
 0x211   : > { %v1178_v11 = vadd.f32 %v2751_v35, %v1177_v48  ;;  %v1321_v29 = vmax.f32 %v1175_v14, 0.0 }
 0x212   : > { %v1324_v28 = vmax.f32 %v1186_v45, 0.0 }
 0x213   : > { %v1322_v30 = vmax.f32 %v1178_v11, 0.0 }
 0x214   : > { %v1368_v31 = vpack.c.bf16 %v1324_v28, %v1323_v15 }
 0x215   : > { %v1367_v32 = vpack.c.bf16 %v1322_v30, %v1321_v29  ;;  %v2323_v33 = vpop.f32.mrb[72].mxu1 }
 0x216   : > { %v1199_v34 = vadd.f32 %v2323_v33, %v2751_v35  ;;  %v1190_v36 = vpop.f32.mrb[73].mxu1 }
 0x217   : > { %v1191_v37 = vadd.f32 %v2751_v35, %v1190_v36  ;;  %v2324_v38 = vpop.f32.mrb[74].mxu1  ;;  %2389 = vmatprep.mubr.msk.bf16.mxu0 %vm1420_vm2, %v1367_v32 }
 0x218   : > { %v1202_v39 = vadd.f32 %v2324_v38, %v2751_v35  ;;  %v1193_v40 = vpop.f32.mrb[75].mxu1  ;;  %2390 = vmatmul.mubr.msk.bf16.gmra.mrb[68].mxu0 %vm1420_vm2, %v1368_v31  ;;  %v1327_v42 = vmax.f32 %v1199_v34, 0.0 }
 0x219   : > { %v1194_v41 = vadd.f32 %v2751_v35, %v1193_v40  ;;  %v1325_v44 = vmax.f32 %v1191_v37, 0.0 }
 0x21a   : > { %v1328_v43 = vmax.f32 %v1202_v39, 0.0 }
 0x21b   : > { %v1326_v46 = vmax.f32 %v1194_v41, 0.0 }
 0x21c   : > { %v1370_v47 = vpack.c.bf16 %v1328_v43, %v1327_v42 }
 0x21d   : > { %v1369_v49 = vpack.c.bf16 %v1326_v46, %v1325_v44  ;;  %v2327_v51 = vpop.f32.mrb[76].mxu1 }
 0x21e   : > { %v1215_v52 = vadd.f32 %v2327_v51, %v2751_v35  ;;  %v1206_v54 = vpop.f32.mrb[77].mxu1 }
 0x21f   : > { %v1207_v55 = vadd.f32 %v2751_v35, %v1206_v54  ;;  %v2328_v56 = vpop.f32.mrb[78].mxu1  ;;  %2393 = vmatprep.mubr.msk.bf16.mxu0 %vm1420_vm2, %v1369_v49 }
 0x220   : > { %v1218_v57 = vadd.f32 %v2328_v56, %v2751_v35  ;;  %v1209_v58 = vpop.f32.mrb[79].mxu1  ;;  %2394 = vmatmul.mubr.msk.bf16.gmra.mrb[72].mxu0 %vm1420_vm2, %v1370_v47  ;;  %v1331_v60 = vmax.f32 %v1215_v52, 0.0 }
 0x221   : > { %v1210_v59 = vadd.f32 %v2751_v35, %v1209_v58  ;;  %v1329_v62 = vmax.f32 %v1207_v55, 0.0 }
 0x222   : > { %v1332_v61 = vmax.f32 %v1218_v57, 0.0 }
 0x223   : > { %v1330_v63 = vmax.f32 %v1210_v59, 0.0  ;;  %v2852_v59 = vld [vmem:[%s3062_s6] ss:$0 sm:$0xff] }
 0x224   : > { %v1372_v0 = vpack.c.bf16 %v1332_v61, %v1331_v60 }
 0x225   : > { %v1371_v1 = vpack.c.bf16 %v1330_v63, %v1329_v62  ;;  %v2331_v2 = vpop.f32.mrb[80].mxu1 }
 0x226   : > { %v1231_v3 = vadd.f32 %v2331_v2, %v2751_v35  ;;  %v1222_v4 = vpop.f32.mrb[81].mxu1 }
 0x227   : > { %v1223_v5 = vadd.f32 %v2751_v35, %v1222_v4  ;;  %v2332_v6 = vpop.f32.mrb[82].mxu1  ;;  %2397 = vmatprep.mubr.msk.bf16.mxu0 %vm1420_vm2, %v1371_v1 }
 0x228   : > { %v1234_v7 = vadd.f32 %v2332_v6, %v2751_v35  ;;  %v1225_v8 = vpop.f32.mrb[83].mxu1  ;;  %2398 = vmatmul.mubr.msk.bf16.gmra.mrb[76].mxu0 %vm1420_vm2, %v1372_v0  ;;  %v1335_v10 = vmax.f32 %v1231_v3, 0.0 }
 0x229   : > { %v1226_v9 = vadd.f32 %v2751_v35, %v1225_v8  ;;  %v1333_v13 = vmax.f32 %v1223_v5, 0.0 }
 0x22a   : > { %v1336_v12 = vmax.f32 %v1234_v7, 0.0 }
 0x22b   : > { %v1334_v16 = vmax.f32 %v1226_v9, 0.0 }
 0x22c   : > { %v1374_v18 = vpack.c.bf16 %v1336_v12, %v1335_v10 }
 0x22d   : > { %v1373_v19 = vpack.c.bf16 %v1334_v16, %v1333_v13  ;;  %v2335_v20 = vpop.f32.mrb[84].mxu1 }
 0x22e   : > { %v1247_v22 = vadd.f32 %v2335_v20, %v2751_v35  ;;  %v1238_v23 = vpop.f32.mrb[85].mxu1 }
 0x22f   : > { %v1239_v25 = vadd.f32 %v2751_v35, %v1238_v23  ;;  %v2336_v26 = vpop.f32.mrb[86].mxu1  ;;  %2401 = vmatprep.mubr.msk.bf16.mxu0 %vm1420_vm2, %v1373_v19 }
 0x230   : > { %v1250_v27 = vadd.f32 %v2336_v26, %v2751_v35  ;;  %v1241_v24 = vpop.f32.mrb[87].mxu1  ;;  %2402 = vmatmul.mubr.msk.bf16.gmra.mrb[80].mxu0 %vm1420_vm2, %v1374_v18  ;;  %v1339_v50 = vmax.f32 %v1247_v22, 0.0 }
 0x231   : > { %v1242_v21 = vadd.f32 %v2751_v35, %v1241_v24  ;;  %v1337_v14 = vmax.f32 %v1239_v25, 0.0 }
 0x232   : > { %v1340_v53 = vmax.f32 %v1250_v27, 0.0 }
 0x233   : > { %v1338_v17 = vmax.f32 %v1242_v21, 0.0 }
 0x234   : > { %v1376_v45 = vpack.c.bf16 %v1340_v53, %v1339_v50 }
 0x235   : > { %v1375_v48 = vpack.c.bf16 %v1338_v17, %v1337_v14  ;;  %v2339_v11 = vpop.f32.mrb[88].mxu1 }
 0x236   : > { %v1263_v15 = vadd.f32 %v2339_v11, %v2751_v35  ;;  %v1254_v28 = vpop.f32.mrb[89].mxu1 }
 0x237   : > { %v1255_v29 = vadd.f32 %v2751_v35, %v1254_v28  ;;  %v2340_v30 = vpop.f32.mrb[90].mxu1  ;;  %2405 = vmatprep.mubr.msk.bf16.mxu0 %vm1420_vm2, %v1375_v48 }
 0x238   : > { %v1266_v31 = vadd.f32 %v2340_v30, %v2751_v35  ;;  %v1257_v32 = vpop.f32.mrb[91].mxu1  ;;  %2406 = vmatmul.mubr.msk.bf16.gmra.mrb[84].mxu0 %vm1420_vm2, %v1376_v45  ;;  %v1343_v34 = vmax.f32 %v1263_v15, 0.0 }
 0x239   : > { %v1258_v33 = vadd.f32 %v2751_v35, %v1257_v32  ;;  %v1341_v37 = vmax.f32 %v1255_v29, 0.0 }
 0x23a   : > { %v1344_v36 = vmax.f32 %v1266_v31, 0.0 }
 0x23b   : > { %v1342_v38 = vmax.f32 %v1258_v33, 0.0 }
 0x23c   : > { %v1378_v39 = vpack.c.bf16 %v1344_v36, %v1343_v34 }
 0x23d   : > { %v1377_v40 = vpack.c.bf16 %v1342_v38, %v1341_v37  ;;  %v2343_v41 = vpop.f32.mrb[92].mxu1 }
 0x23e   : > { %v1279_v42 = vadd.f32 %v2343_v41, %v2751_v35  ;;  %v1270_v43 = vpop.f32.mrb[93].mxu1 }
 0x23f   : > { %v1271_v44 = vadd.f32 %v2751_v35, %v1270_v43  ;;  %v2344_v46 = vpop.f32.mrb[94].mxu1  ;;  %2409 = vmatprep.mubr.msk.bf16.mxu0 %vm1420_vm2, %v1377_v40 }
 0x240   : > { %v1282_v47 = vadd.f32 %v2344_v46, %v2751_v35  ;;  %v1273_v49 = vpop.f32.mrb[95].mxu1  ;;  %2410 = vmatmul.mubr.msk.bf16.gmra.mrb[88].mxu0 %vm1420_vm2, %v1378_v39  ;;  %v1347_v52 = vmax.f32 %v1279_v42, 0.0 }
 0x241   : > { %v1274_v51 = vadd.f32 %v2751_v35, %v1273_v49  ;;  %v1345_v55 = vmax.f32 %v1271_v44, 0.0 }
 0x242   : > { %v1348_v54 = vmax.f32 %v1282_v47, 0.0 }
 0x243   : > { %v1346_v56 = vmax.f32 %v1274_v51, 0.0 }
 0x244   : > { %v1380_v57 = vpack.c.bf16 %v1348_v54, %v1347_v52 }
 0x245   : > { %v1379_v58 = vpack.c.bf16 %v1346_v56, %v1345_v55 }
 0x247   : > { %2413 = vmatprep.mubr.msk.bf16.mxu0 %vm1420_vm2, %v1379_v58 }
 0x248   : > { %2414 = vmatmul.mubr.msk.bf16.gmra.mrb[92].mxu0 %vm1420_vm2, %v1380_v57 }
 0x2a3   : > { %v2355_v60 = vpop.f32.mrb[32].mxu0 }
 0x2a4   : > { %v1560_v61 = vadd.f32 %v2355_v60, %v2852_v59  ;;  %v1551_v62 = vpop.f32.mrb[33].mxu0 }
 0x2a5   : > { %v1552_v35 = vadd.f32 %v2852_v59, %v1551_v62  ;;  %v2356_v63 = vpop.f32.mrb[34].mxu0 }
 0x2a6   : > { %v1808_v0 = vmax.f32 %v1560_v61, 0.0  ;;  %v1563_v1 = vadd.f32 %v2356_v63, %v2852_v59  ;;  %v1554_v2 = vpop.f32.mrb[35].mxu0 }
 0x2a7   : > { %v1806_v3 = vmax.f32 %v1552_v35, 0.0  ;;  %v1555_v4 = vadd.f32 %v2852_v59, %v1554_v2 }
 0x2a8   : > { %1873 = vst.msk [vmem:[%s2860_s10 + $0x10] sm:$0xff] %vm1870_vm3, %v1808_v0  ;;  %v1809_v5 = vmax.f32 %v1563_v1, 0.0 }
 0x2a9   : > { %1871 = vst.msk [vmem:[%s2860_s10] sm:$0xff] %vm1870_vm3, %v1806_v3  ;;  %v1807_v6 = vmax.f32 %v1555_v4, 0.0 }
 0x2aa   : > { %1874 = vst.msk [vmem:[%s2860_s10 + $0x18] sm:$0xff] %vm1870_vm3, %v1809_v5 }
 0x2ab   : > { %1872 = vst.msk [vmem:[%s2860_s10 + $0x8] sm:$0xff] %vm1870_vm3, %v1807_v6  ;;  %v2359_v7 = vpop.f32.mrb[36].mxu0 }
 0x2ac   : > { %v1576_v8 = vadd.f32 %v2359_v7, %v2852_v59  ;;  %v1567_v9 = vpop.f32.mrb[37].mxu0 }
 0x2ad   : > { %v1568_v10 = vadd.f32 %v2852_v59, %v1567_v9  ;;  %v2360_v12 = vpop.f32.mrb[38].mxu0 }
 0x2ae   : > { %v1812_v13 = vmax.f32 %v1576_v8, 0.0  ;;  %v1579_v16 = vadd.f32 %v2360_v12, %v2852_v59  ;;  %v1570_v18 = vpop.f32.mrb[39].mxu0 }
 0x2af   : > { %v1810_v19 = vmax.f32 %v1568_v10, 0.0  ;;  %v1571_v20 = vadd.f32 %v2852_v59, %v1570_v18 }
 0x2b0   : > { %1877 = vst.msk [vmem:[%s2860_s10 + $0x30] sm:$0xff] %vm1870_vm3, %v1812_v13  ;;  %v1813_v22 = vmax.f32 %v1579_v16, 0.0 }
 0x2b1   : > { %1875 = vst.msk [vmem:[%s2860_s10 + $0x20] sm:$0xff] %vm1870_vm3, %v1810_v19  ;;  %v1811_v23 = vmax.f32 %v1571_v20, 0.0 }
 0x2b2   : > { %1878 = vst.msk [vmem:[%s2860_s10 + $0x38] sm:$0xff] %vm1870_vm3, %v1813_v22 }
 0x2b3   : > { %1876 = vst.msk [vmem:[%s2860_s10 + $0x28] sm:$0xff] %vm1870_vm3, %v1811_v23  ;;  %v2363_v25 = vpop.f32.mrb[40].mxu0 }
 0x2b4   : > { %v1592_v26 = vadd.f32 %v2363_v25, %v2852_v59  ;;  %v1583_v27 = vpop.f32.mrb[41].mxu0 }
 0x2b5   : > { %v1584_v24 = vadd.f32 %v2852_v59, %v1583_v27  ;;  %v2364_v21 = vpop.f32.mrb[42].mxu0 }
 0x2b6   : > { %v1816_v50 = vmax.f32 %v1592_v26, 0.0  ;;  %v1595_v53 = vadd.f32 %v2364_v21, %v2852_v59  ;;  %v1586_v14 = vpop.f32.mrb[43].mxu0 }
 0x2b7   : > { %v1814_v17 = vmax.f32 %v1584_v24, 0.0  ;;  %v1587_v45 = vadd.f32 %v2852_v59, %v1586_v14 }
 0x2b8   : > { %1881 = vst.msk [vmem:[%s2860_s10 + $0x50] sm:$0xff] %vm1870_vm3, %v1816_v50  ;;  %v1817_v48 = vmax.f32 %v1595_v53, 0.0 }
 0x2b9   : > { %1879 = vst.msk [vmem:[%s2860_s10 + $0x40] sm:$0xff] %vm1870_vm3, %v1814_v17  ;;  %v1815_v11 = vmax.f32 %v1587_v45, 0.0 }
 0x2ba   : > { %1882 = vst.msk [vmem:[%s2860_s10 + $0x58] sm:$0xff] %vm1870_vm3, %v1817_v48 }
 0x2bb   : > { %1880 = vst.msk [vmem:[%s2860_s10 + $0x48] sm:$0xff] %vm1870_vm3, %v1815_v11  ;;  %v2367_v15 = vpop.f32.mrb[44].mxu0 }
 0x2bc   : > { %v1608_v28 = vadd.f32 %v2367_v15, %v2852_v59  ;;  %v1599_v29 = vpop.f32.mrb[45].mxu0 }
 0x2bd   : > { %v1600_v30 = vadd.f32 %v2852_v59, %v1599_v29  ;;  %v2368_v31 = vpop.f32.mrb[46].mxu0 }
 0x2be   : > { %v1820_v32 = vmax.f32 %v1608_v28, 0.0  ;;  %v1611_v33 = vadd.f32 %v2368_v31, %v2852_v59  ;;  %v1602_v34 = vpop.f32.mrb[47].mxu0 }
 0x2bf   : > { %v1818_v36 = vmax.f32 %v1600_v30, 0.0  ;;  %v1603_v37 = vadd.f32 %v2852_v59, %v1602_v34 }
 0x2c0   : > { %1885 = vst.msk [vmem:[%s2860_s10 + $0x70] sm:$0xff] %vm1870_vm3, %v1820_v32  ;;  %v1821_v38 = vmax.f32 %v1611_v33, 0.0 }
 0x2c1   : > { %1883 = vst.msk [vmem:[%s2860_s10 + $0x60] sm:$0xff] %vm1870_vm3, %v1818_v36  ;;  %v1819_v39 = vmax.f32 %v1603_v37, 0.0 }
 0x2c2   : > { %1886 = vst.msk [vmem:[%s2860_s10 + $0x78] sm:$0xff] %vm1870_vm3, %v1821_v38 }
 0x2c3   : > { %1884 = vst.msk [vmem:[%s2860_s10 + $0x68] sm:$0xff] %vm1870_vm3, %v1819_v39  ;;  %v2371_v40 = vpop.f32.mrb[48].mxu0 }
 0x2c4   : > { %v1624_v41 = vadd.f32 %v2371_v40, %v2852_v59  ;;  %v1615_v42 = vpop.f32.mrb[49].mxu0 }
 0x2c5   : > { %v1616_v43 = vadd.f32 %v2852_v59, %v1615_v42  ;;  %v2372_v44 = vpop.f32.mrb[50].mxu0 }
 0x2c6   : > { %v1824_v46 = vmax.f32 %v1624_v41, 0.0  ;;  %v1627_v47 = vadd.f32 %v2372_v44, %v2852_v59  ;;  %v1618_v49 = vpop.f32.mrb[51].mxu0 }
 0x2c7   : > { %v1822_v51 = vmax.f32 %v1616_v43, 0.0  ;;  %v1619_v52 = vadd.f32 %v2852_v59, %v1618_v49 }
 0x2c8   : > { %1889 = vst.msk [vmem:[%s2860_s10 + $0x90] sm:$0xff] %vm1870_vm3, %v1824_v46  ;;  %v1825_v54 = vmax.f32 %v1627_v47, 0.0 }
 0x2c9   : > { %1887 = vst.msk [vmem:[%s2860_s10 + $0x80] sm:$0xff] %vm1870_vm3, %v1822_v51  ;;  %v1823_v55 = vmax.f32 %v1619_v52, 0.0 }
 0x2ca   : > { %1890 = vst.msk [vmem:[%s2860_s10 + $0x98] sm:$0xff] %vm1870_vm3, %v1825_v54 }
 0x2cb   : > { %1888 = vst.msk [vmem:[%s2860_s10 + $0x88] sm:$0xff] %vm1870_vm3, %v1823_v55  ;;  %v2375_v56 = vpop.f32.mrb[52].mxu0 }
 0x2cc   : > { %v1640_v57 = vadd.f32 %v2375_v56, %v2852_v59  ;;  %v1631_v58 = vpop.f32.mrb[53].mxu0 }
 0x2cd   : > { %v1632_v60 = vadd.f32 %v2852_v59, %v1631_v58  ;;  %v2376_v61 = vpop.f32.mrb[54].mxu0 }
 0x2ce   : > { %v1828_v62 = vmax.f32 %v1640_v57, 0.0  ;;  %v1643_v35 = vadd.f32 %v2376_v61, %v2852_v59  ;;  %v1634_v63 = vpop.f32.mrb[55].mxu0 }
 0x2cf   : > { %v1826_v0 = vmax.f32 %v1632_v60, 0.0  ;;  %v1635_v1 = vadd.f32 %v2852_v59, %v1634_v63 }
 0x2d0   : > { %1893 = vst.msk [vmem:[%s2860_s10 + $0xb0] sm:$0xff] %vm1870_vm3, %v1828_v62  ;;  %v1829_v2 = vmax.f32 %v1643_v35, 0.0 }
 0x2d1   : > { %1891 = vst.msk [vmem:[%s2860_s10 + $0xa0] sm:$0xff] %vm1870_vm3, %v1826_v0  ;;  %v1827_v3 = vmax.f32 %v1635_v1, 0.0 }
 0x2d2   : > { %1894 = vst.msk [vmem:[%s2860_s10 + $0xb8] sm:$0xff] %vm1870_vm3, %v1829_v2 }
 0x2d3   : > { %1892 = vst.msk [vmem:[%s2860_s10 + $0xa8] sm:$0xff] %vm1870_vm3, %v1827_v3  ;;  %v2379_v4 = vpop.f32.mrb[56].mxu0 }
 0x2d4   : > { %v1656_v5 = vadd.f32 %v2379_v4, %v2852_v59  ;;  %v1647_v6 = vpop.f32.mrb[57].mxu0 }
 0x2d5   : > { %v1648_v7 = vadd.f32 %v2852_v59, %v1647_v6  ;;  %v2380_v8 = vpop.f32.mrb[58].mxu0 }
 0x2d6   : > { %v1832_v9 = vmax.f32 %v1656_v5, 0.0  ;;  %v1659_v10 = vadd.f32 %v2380_v8, %v2852_v59  ;;  %v1650_v12 = vpop.f32.mrb[59].mxu0 }
 0x2d7   : > { %v1830_v13 = vmax.f32 %v1648_v7, 0.0  ;;  %v1651_v16 = vadd.f32 %v2852_v59, %v1650_v12 }
 0x2d8   : > { %1897 = vst.msk [vmem:[%s2860_s10 + $0xd0] sm:$0xff] %vm1870_vm3, %v1832_v9  ;;  %v1833_v18 = vmax.f32 %v1659_v10, 0.0 }
 0x2d9   : > { %1895 = vst.msk [vmem:[%s2860_s10 + $0xc0] sm:$0xff] %vm1870_vm3, %v1830_v13  ;;  %v1831_v19 = vmax.f32 %v1651_v16, 0.0 }
 0x2da   : > { %1898 = vst.msk [vmem:[%s2860_s10 + $0xd8] sm:$0xff] %vm1870_vm3, %v1833_v18 }
 0x2db   : > { %1896 = vst.msk [vmem:[%s2860_s10 + $0xc8] sm:$0xff] %vm1870_vm3, %v1831_v19  ;;  %v2383_v20 = vpop.f32.mrb[60].mxu0 }
 0x2dc   : > { %v1672_v22 = vadd.f32 %v2383_v20, %v2852_v59  ;;  %v1663_v23 = vpop.f32.mrb[61].mxu0 }
 0x2dd   : > { %v1664_v25 = vadd.f32 %v2852_v59, %v1663_v23  ;;  %v2384_v26 = vpop.f32.mrb[62].mxu0 }
 0x2de   : > { %v1836_v27 = vmax.f32 %v1672_v22, 0.0  ;;  %v1675_v24 = vadd.f32 %v2384_v26, %v2852_v59  ;;  %v1666_v21 = vpop.f32.mrb[63].mxu0 }
 0x2df   : > { %v1834_v50 = vmax.f32 %v1664_v25, 0.0  ;;  %v1667_v53 = vadd.f32 %v2852_v59, %v1666_v21 }
 0x2e0   : > { %1901 = vst.msk [vmem:[%s2860_s10 + $0xf0] sm:$0xff] %vm1870_vm3, %v1836_v27  ;;  %v1837_v14 = vmax.f32 %v1675_v24, 0.0 }
 0x2e1   : > { %1899 = vst.msk [vmem:[%s2860_s10 + $0xe0] sm:$0xff] %vm1870_vm3, %v1834_v50  ;;  %v1835_v17 = vmax.f32 %v1667_v53, 0.0 }
 0x2e2   : > { %1902 = vst.msk [vmem:[%s2860_s10 + $0xf8] sm:$0xff] %vm1870_vm3, %v1837_v14 }
 0x2e3   : > { %1900 = vst.msk [vmem:[%s2860_s10 + $0xe8] sm:$0xff] %vm1870_vm3, %v1835_v17  ;;  %v2387_v45 = vpop.f32.mrb[64].mxu0 }
 0x2e4   : > { %v1688_v48 = vadd.f32 %v2387_v45, %v2852_v59  ;;  %v1679_v11 = vpop.f32.mrb[65].mxu0 }
 0x2e5   : > { %v1680_v15 = vadd.f32 %v2852_v59, %v1679_v11  ;;  %v2388_v28 = vpop.f32.mrb[66].mxu0 }
 0x2e6   : > { %v1840_v29 = vmax.f32 %v1688_v48, 0.0  ;;  %v1691_v30 = vadd.f32 %v2388_v28, %v2852_v59  ;;  %v1682_v31 = vpop.f32.mrb[67].mxu0 }
 0x2e7   : > { %v1838_v32 = vmax.f32 %v1680_v15, 0.0  ;;  %v1683_v33 = vadd.f32 %v2852_v59, %v1682_v31 }
 0x2e8   : > { %1905 = vst.msk [vmem:[%s2860_s10 + $0x110] sm:$0xff] %vm1870_vm3, %v1840_v29  ;;  %v1841_v34 = vmax.f32 %v1691_v30, 0.0 }
 0x2e9   : > { %1903 = vst.msk [vmem:[%s2860_s10 + $0x100] sm:$0xff] %vm1870_vm3, %v1838_v32  ;;  %v1839_v36 = vmax.f32 %v1683_v33, 0.0 }
 0x2ea   : > { %1906 = vst.msk [vmem:[%s2860_s10 + $0x118] sm:$0xff] %vm1870_vm3, %v1841_v34 }
 0x2eb   : > { %1904 = vst.msk [vmem:[%s2860_s10 + $0x108] sm:$0xff] %vm1870_vm3, %v1839_v36  ;;  %v2391_v37 = vpop.f32.mrb[68].mxu0 }
 0x2ec   : > { %v1704_v38 = vadd.f32 %v2391_v37, %v2852_v59  ;;  %v1695_v39 = vpop.f32.mrb[69].mxu0 }
 0x2ed   : > { %v1696_v40 = vadd.f32 %v2852_v59, %v1695_v39  ;;  %v2392_v41 = vpop.f32.mrb[70].mxu0 }
 0x2ee   : > { %v1844_v42 = vmax.f32 %v1704_v38, 0.0  ;;  %v1707_v43 = vadd.f32 %v2392_v41, %v2852_v59  ;;  %v1698_v44 = vpop.f32.mrb[71].mxu0 }
 0x2ef   : > { %v1842_v46 = vmax.f32 %v1696_v40, 0.0  ;;  %v1699_v47 = vadd.f32 %v2852_v59, %v1698_v44 }
 0x2f0   : > { %1909 = vst.msk [vmem:[%s2860_s10 + $0x130] sm:$0xff] %vm1870_vm3, %v1844_v42  ;;  %v1845_v49 = vmax.f32 %v1707_v43, 0.0 }
 0x2f1   : > { %1907 = vst.msk [vmem:[%s2860_s10 + $0x120] sm:$0xff] %vm1870_vm3, %v1842_v46  ;;  %v1843_v51 = vmax.f32 %v1699_v47, 0.0 }
 0x2f2   : > { %1910 = vst.msk [vmem:[%s2860_s10 + $0x138] sm:$0xff] %vm1870_vm3, %v1845_v49 }
 0x2f3   : > { %1908 = vst.msk [vmem:[%s2860_s10 + $0x128] sm:$0xff] %vm1870_vm3, %v1843_v51  ;;  %v2395_v52 = vpop.f32.mrb[72].mxu0 }
 0x2f4   : > { %v1720_v54 = vadd.f32 %v2395_v52, %v2852_v59  ;;  %v1711_v55 = vpop.f32.mrb[73].mxu0 }
 0x2f5   : > { %v1712_v56 = vadd.f32 %v2852_v59, %v1711_v55  ;;  %v2396_v57 = vpop.f32.mrb[74].mxu0 }
 0x2f6   : > { %v1848_v58 = vmax.f32 %v1720_v54, 0.0  ;;  %v1723_v60 = vadd.f32 %v2396_v57, %v2852_v59  ;;  %v1714_v61 = vpop.f32.mrb[75].mxu0 }
 0x2f7   : > { %v1846_v62 = vmax.f32 %v1712_v56, 0.0  ;;  %v1715_v35 = vadd.f32 %v2852_v59, %v1714_v61 }
 0x2f8   : > { %1913 = vst.msk [vmem:[%s2860_s10 + $0x150] sm:$0xff] %vm1870_vm3, %v1848_v58  ;;  %v1849_v63 = vmax.f32 %v1723_v60, 0.0 }
 0x2f9   : > { %1911 = vst.msk [vmem:[%s2860_s10 + $0x140] sm:$0xff] %vm1870_vm3, %v1846_v62  ;;  %v1847_v0 = vmax.f32 %v1715_v35, 0.0 }
 0x2fa   : > { %1914 = vst.msk [vmem:[%s2860_s10 + $0x158] sm:$0xff] %vm1870_vm3, %v1849_v63 }
 0x2fb   : > { %1912 = vst.msk [vmem:[%s2860_s10 + $0x148] sm:$0xff] %vm1870_vm3, %v1847_v0  ;;  %v2399_v1 = vpop.f32.mrb[76].mxu0 }
 0x2fc   : > { %v1736_v2 = vadd.f32 %v2399_v1, %v2852_v59  ;;  %v1727_v3 = vpop.f32.mrb[77].mxu0 }
 0x2fd   : > { %v1728_v4 = vadd.f32 %v2852_v59, %v1727_v3  ;;  %v2400_v5 = vpop.f32.mrb[78].mxu0 }
 0x2fe   : > { %v1852_v6 = vmax.f32 %v1736_v2, 0.0  ;;  %v1739_v7 = vadd.f32 %v2400_v5, %v2852_v59  ;;  %v1730_v8 = vpop.f32.mrb[79].mxu0 }
 0x2ff   : > { %v1850_v9 = vmax.f32 %v1728_v4, 0.0  ;;  %v1731_v10 = vadd.f32 %v2852_v59, %v1730_v8 }
 0x300   : > { %1917 = vst.msk [vmem:[%s2860_s10 + $0x170] sm:$0xff] %vm1870_vm3, %v1852_v6  ;;  %v1853_v12 = vmax.f32 %v1739_v7, 0.0 }
 0x301   : > { %1915 = vst.msk [vmem:[%s2860_s10 + $0x160] sm:$0xff] %vm1870_vm3, %v1850_v9  ;;  %v1851_v13 = vmax.f32 %v1731_v10, 0.0 }
 0x302   : > { %1918 = vst.msk [vmem:[%s2860_s10 + $0x178] sm:$0xff] %vm1870_vm3, %v1853_v12 }
 0x303   : > { %1916 = vst.msk [vmem:[%s2860_s10 + $0x168] sm:$0xff] %vm1870_vm3, %v1851_v13  ;;  %v2403_v16 = vpop.f32.mrb[80].mxu0 }
 0x304   : > { %v1752_v18 = vadd.f32 %v2403_v16, %v2852_v59  ;;  %v1743_v19 = vpop.f32.mrb[81].mxu0 }
 0x305   : > { %v1744_v20 = vadd.f32 %v2852_v59, %v1743_v19  ;;  %v2404_v22 = vpop.f32.mrb[82].mxu0 }
 0x306   : > { %v1856_v23 = vmax.f32 %v1752_v18, 0.0  ;;  %v1755_v25 = vadd.f32 %v2404_v22, %v2852_v59  ;;  %v1746_v26 = vpop.f32.mrb[83].mxu0 }
 0x307   : > { %v1854_v27 = vmax.f32 %v1744_v20, 0.0  ;;  %v1747_v24 = vadd.f32 %v2852_v59, %v1746_v26 }
 0x308   : > { %1921 = vst.msk [vmem:[%s2860_s10 + $0x190] sm:$0xff] %vm1870_vm3, %v1856_v23  ;;  %v1857_v21 = vmax.f32 %v1755_v25, 0.0 }
 0x309   : > { %1919 = vst.msk [vmem:[%s2860_s10 + $0x180] sm:$0xff] %vm1870_vm3, %v1854_v27  ;;  %v1855_v50 = vmax.f32 %v1747_v24, 0.0 }
 0x30a   : > { %1922 = vst.msk [vmem:[%s2860_s10 + $0x198] sm:$0xff] %vm1870_vm3, %v1857_v21 }
 0x30b   : > { %1920 = vst.msk [vmem:[%s2860_s10 + $0x188] sm:$0xff] %vm1870_vm3, %v1855_v50  ;;  %v2407_v53 = vpop.f32.mrb[84].mxu0 }
 0x30c   : > { %v1768_v14 = vadd.f32 %v2407_v53, %v2852_v59  ;;  %v1759_v17 = vpop.f32.mrb[85].mxu0 }
 0x30d   : > { %v1760_v45 = vadd.f32 %v2852_v59, %v1759_v17  ;;  %v2408_v48 = vpop.f32.mrb[86].mxu0 }
 0x30e   : > { %v1860_v11 = vmax.f32 %v1768_v14, 0.0  ;;  %v1771_v15 = vadd.f32 %v2408_v48, %v2852_v59  ;;  %v1762_v28 = vpop.f32.mrb[87].mxu0 }
 0x30f   : > { %v1858_v29 = vmax.f32 %v1760_v45, 0.0  ;;  %v1763_v30 = vadd.f32 %v2852_v59, %v1762_v28 }
 0x310   : > { %1925 = vst.msk [vmem:[%s2860_s10 + $0x1b0] sm:$0xff] %vm1870_vm3, %v1860_v11  ;;  %v1861_v31 = vmax.f32 %v1771_v15, 0.0 }
 0x311   : > { %1923 = vst.msk [vmem:[%s2860_s10 + $0x1a0] sm:$0xff] %vm1870_vm3, %v1858_v29  ;;  %v1859_v32 = vmax.f32 %v1763_v30, 0.0 }
 0x312   : > { %1926 = vst.msk [vmem:[%s2860_s10 + $0x1b8] sm:$0xff] %vm1870_vm3, %v1861_v31 }
 0x313   : > { %1924 = vst.msk [vmem:[%s2860_s10 + $0x1a8] sm:$0xff] %vm1870_vm3, %v1859_v32  ;;  %v2411_v33 = vpop.f32.mrb[88].mxu0 }
 0x314   : > { %v1784_v34 = vadd.f32 %v2411_v33, %v2852_v59  ;;  %v1775_v36 = vpop.f32.mrb[89].mxu0 }
 0x315   : > { %v1776_v37 = vadd.f32 %v2852_v59, %v1775_v36  ;;  %v2412_v38 = vpop.f32.mrb[90].mxu0 }
 0x316   : > { %v1864_v39 = vmax.f32 %v1784_v34, 0.0  ;;  %v1787_v40 = vadd.f32 %v2412_v38, %v2852_v59  ;;  %v1778_v41 = vpop.f32.mrb[91].mxu0 }
 0x317   : > { %v1862_v42 = vmax.f32 %v1776_v37, 0.0  ;;  %v1779_v43 = vadd.f32 %v2852_v59, %v1778_v41 }
 0x318   : > { %1929 = vst.msk [vmem:[%s2860_s10 + $0x1d0] sm:$0xff] %vm1870_vm3, %v1864_v39  ;;  %v1865_v44 = vmax.f32 %v1787_v40, 0.0 }
 0x319   : > { %1927 = vst.msk [vmem:[%s2860_s10 + $0x1c0] sm:$0xff] %vm1870_vm3, %v1862_v42  ;;  %v1863_v46 = vmax.f32 %v1779_v43, 0.0 }
 0x31a   : > { %1930 = vst.msk [vmem:[%s2860_s10 + $0x1d8] sm:$0xff] %vm1870_vm3, %v1865_v44 }
 0x31b   : > { %1928 = vst.msk [vmem:[%s2860_s10 + $0x1c8] sm:$0xff] %vm1870_vm3, %v1863_v46  ;;  %v2415_v47 = vpop.f32.mrb[92].mxu0 }
 0x31c   : > { %v1800_v49 = vadd.f32 %v2415_v47, %v2852_v59  ;;  %v1791_v51 = vpop.f32.mrb[93].mxu0 }
 0x31d   : > { %v1792_v52 = vadd.f32 %v2852_v59, %v1791_v51  ;;  %v2416_v54 = vpop.f32.mrb[94].mxu0 }
 0x31e   : > { %v1868_v55 = vmax.f32 %v1800_v49, 0.0  ;;  %v1803_v56 = vadd.f32 %v2416_v54, %v2852_v59  ;;  %v1794_v57 = vpop.f32.mrb[95].mxu0 }
 0x31f   : > { %v1866_v58 = vmax.f32 %v1792_v52, 0.0  ;;  %v1795_v60 = vadd.f32 %v2852_v59, %v1794_v57 }
 0x320   : > { %1933 = vst.msk [vmem:[%s2860_s10 + $0x1f0] sm:$0xff] %vm1870_vm3, %v1868_v55  ;;  %v1869_v61 = vmax.f32 %v1803_v56, 0.0 }
 0x321   : > { %1931 = vst.msk [vmem:[%s2860_s10 + $0x1e0] sm:$0xff] %vm1870_vm3, %v1866_v58  ;;  %v1867_v62 = vmax.f32 %v1795_v60, 0.0 }
 0x322   : > { %1934 = vst.msk [vmem:[%s2860_s10 + $0x1f8] sm:$0xff] %vm1870_vm3, %v1869_v61 }
 0x323   : > { %1932 = vst.msk [vmem:[%s2860_s10 + $0x1e8] sm:$0xff] %vm1870_vm3, %v1867_v62 }
 0x324 PF: > { %s17_s24 = sadd.s32 1, %s2440_s24  }
 0x325   : > { %p14_p4 = scmp.ge.s32.totalorder %s17_s24, 4  }
 0x327   :  { %16 = sbr.rel (!%p14_p4) target bundleno = 1 (0x1), region = 78 }

</bundles_post_ra>
